<compile_context>
chip_gen: v5e
topology: v5e:2x2
jax: 0.10.0
libtpu: 0.0.40
codegen_flags: <defaults>
</compile_context>

<pallas_src>
import functools

import jax
import jax.numpy as jnp
from jax.experimental import pallas as pl
from jax.experimental.pallas import tpu as pltpu


# ----------------------------------------------------------------------------
# Fused Pallas kernel: stacked LSTM over the full sequence + decoder Linear.
# Single invocation (no grid); time recurrence fully unrolled in-kernel.
# PyTorch gate order: i, f, g, o.
# ----------------------------------------------------------------------------
def _fused_lstm_kernel(nlayers, seq_len, batch, nhid, *refs):
    """refs layout:
      inputs : x2d (S*B, F), h0 (L,B,H), c0 (L,B,H),
               [W_ih^T (in,4H), W_hh^T (H,4H), bias (1,4H)] * nlayers,
               dec_W^T (H,C), dec_b (1,C)
      outputs: logits (B,C), h_N (L,B,H), c_N (L,B,H)
      scratch: hseq (S*B, H) — inter-layer activations, stays in VMEM
    """
    H = nhid
    x2d_ref, h0_ref, c0_ref = refs[0], refs[1], refs[2]
    layer_refs = refs[3:3 + 3 * nlayers]
    dw_ref = refs[3 + 3 * nlayers]
    db_ref = refs[4 + 3 * nlayers]
    out_ref = refs[5 + 3 * nlayers]
    hN_ref = refs[6 + 3 * nlayers]
    cN_ref = refs[7 + 3 * nlayers]
    hseq_sc = refs[8 + 3 * nlayers]

    layer_in = x2d_ref[...]                                  # (S*B, in_dim) f32
    h = None
    for layer in range(nlayers):
        wih = layer_refs[3 * layer][...]                     # (in_dim, 4H)
        whh = layer_refs[3 * layer + 1][...]                 # (H, 4H)
        b = layer_refs[3 * layer + 2][...]                   # (1, 4H)

        # Hoisted input projection: ONE matmul for all timesteps, bias added once.
        gates_x = jnp.dot(layer_in, wih,
                          preferred_element_type=jnp.float32) + b   # (S*B, 4H)

        h = h0_ref[layer]                                    # (B, H)
        c = c0_ref[layer]
        # Fully unrolled recurrence: only h @ W_hh^T + gate math on the serial path.
        for t in range(seq_len):
            g_all = (gates_x[t * batch:(t + 1) * batch, :]
                     + jnp.dot(h, whh, preferred_element_type=jnp.float32))
            # PyTorch gate order i, f, g, o.  (32-lane slices of one 128-lane
            # vreg — cheap at H=32; use a gate-major layout if H is scaled up.)
            i_g = jax.nn.sigmoid(g_all[:, 0 * H:1 * H])
            f_g = jax.nn.sigmoid(g_all[:, 1 * H:2 * H])
            g_g = jnp.tanh(g_all[:, 2 * H:3 * H])
            o_g = jax.nn.sigmoid(g_all[:, 3 * H:4 * H])
            c = f_g * c + i_g * g_g
            h = o_g * jnp.tanh(c)
            if layer < nlayers - 1:                          # last layer's h_seq unused
                hseq_sc[t * batch:(t + 1) * batch, :] = h

        hN_ref[layer] = h
        cN_ref[layer] = c
        if layer < nlayers - 1:
            layer_in = hseq_sc[...]                          # next layer's input (VMEM)

    # nn.Dropout in eval mode is identity.
    # TODO(synk): training-mode dropout (p = 1 - args.dropout) with RNG mask not reproduced.
    out_ref[...] = (jnp.dot(h, dw_ref[...], preferred_element_type=jnp.float32)
                    + db_ref[...])


# ----------------------------------------------------------------------------
# Parameter preparation (done ONCE, not per forward): transpose weights,
# combine biases, cast to f32.
# ----------------------------------------------------------------------------
def prepare_params(params):
    prepared = {"lstm": []}
    for (w_ih, w_hh, b_ih, b_hh) in params["lstm"]:
        h4 = w_ih.shape[0]
        prepared["lstm"].append((
            jnp.asarray(w_ih, jnp.float32).T,                        # (in_dim, 4H)
            jnp.asarray(w_hh, jnp.float32).T,                        # (H, 4H)
            (b_ih + b_hh).reshape(1, h4).astype(jnp.float32),        # (1, 4H)
        ))
    num_class = params["dec_w"].shape[0]
    prepared["dec_w_t"] = jnp.asarray(params["dec_w"], jnp.float32).T  # (H, C)
    prepared["dec_b2"] = params["dec_b"].reshape(1, num_class).astype(jnp.float32)
    return prepared


# ----------------------------------------------------------------------------
# SimpleLSTM forward: one fused pallas_call.
# ----------------------------------------------------------------------------
def simple_lstm_forward(prepared, data, hidden, num_class):
    h0, c0 = hidden                                          # (L, B, H) each
    L, B, H = h0.shape
    S = data.shape[0]
    F = data.shape[2]

    x2d = data.reshape(S * B, F).astype(jnp.float32)         # row t*B..t*B+B-1 == data[t]

    flat_layer_params = []
    for (wih_t, whh_t, b) in prepared["lstm"]:
        flat_layer_params += [wih_t, whh_t, b]

    n_in = 3 + 3 * L + 2
    vmem = pl.BlockSpec(memory_space=pltpu.MemorySpace.VMEM)

    out, h_n, c_n = pl.pallas_call(
        functools.partial(_fused_lstm_kernel, L, S, B, H),
        out_shape=(jax.ShapeDtypeStruct((B, num_class), jnp.float32),
                   jax.ShapeDtypeStruct((L, B, H), jnp.float32),
                   jax.ShapeDtypeStruct((L, B, H), jnp.float32)),
        in_specs=[vmem] * n_in,
        out_specs=(vmem, vmem, vmem),
        scratch_shapes=[pltpu.VMEM((S * B, H), jnp.float32)],
    )(x2d, jnp.asarray(h0, jnp.float32), jnp.asarray(c0, jnp.float32),
      *flat_layer_params, prepared["dec_w_t"], prepared["dec_b2"])

    out = out.reshape(-1, B, num_class)                      # (1, B, C)
    return out, (h_n, c_n)


# ----------------------------------------------------------------------------
# Pure-JAX reference (for correctness check)
# ----------------------------------------------------------------------------
def reference_forward(params, data, hidden, num_class):
    h0, c0 = hidden
    nlayers = h0.shape[0]
    batch = data.shape[1]
    x = data
    h_finals, c_finals = [], []
    for layer in range(nlayers):
        w_ih, w_hh, b_ih, b_hh = params["lstm"][layer]
        H = w_hh.shape[1]

        def step(carry, x_t):
            h, c = carry
            gates = x_t @ w_ih.T + h @ w_hh.T + b_ih + b_hh
            i = jax.nn.sigmoid(gates[:, 0 * H:1 * H])
            f = jax.nn.sigmoid(gates[:, 1 * H:2 * H])
            g = jnp.tanh(gates[:, 2 * H:3 * H])
            o = jax.nn.sigmoid(gates[:, 3 * H:4 * H])
            c_new = f * c + i * g
            h_new = o * jnp.tanh(c_new)
            return (h_new, c_new), h_new

        (h_n, c_n), hseq = jax.lax.scan(step, (h0[layer], c0[layer]), x)
        x = hseq
        h_finals.append(h_n)
        c_finals.append(c_n)
    out = h_finals[-1] @ params["dec_w"].T + params["dec_b"]
    return out.reshape(-1, batch, num_class), (jnp.stack(h_finals), jnp.stack(c_finals))


# ----------------------------------------------------------------------------
# Deterministic parameter init (shapes from SimpleLSTM.__init__)
# ----------------------------------------------------------------------------
def init_params(key, num_features, nhid, nlayers, num_class):
    params = {"lstm": []}
    k = 1.0 / jnp.sqrt(nhid)
    for layer in range(nlayers):
        in_dim = num_features if layer == 0 else nhid
        key, k1, k2, k3, k4 = jax.random.split(key, 5)
        w_ih = jax.random.uniform(k1, (4 * nhid, in_dim), jnp.float32, -k, k)
        w_hh = jax.random.uniform(k2, (4 * nhid, nhid), jnp.float32, -k, k)
        b_ih = jax.random.uniform(k3, (4 * nhid,), jnp.float32, -k, k)
        b_hh = jax.random.uniform(k4, (4 * nhid,), jnp.float32, -k, k)
        params["lstm"].append((w_ih, w_hh, b_ih, b_hh))
    key, kd = jax.random.split(key)
    # init_weights(): decoder.weight ~ U(-0.1, 0.1), decoder.bias = 0
    params["dec_w"] = jax.random.uniform(kd, (num_class, nhid), jnp.float32, -0.1, 0.1)
    params["dec_b"] = jnp.zeros((num_class,), jnp.float32)
    return params


if __name__ == "__main__":
    seq_len, batch = 8, 2
    num_features, nhid, nlayers, num_class = 8, 32, 2, 4

    key = jax.random.PRNGKey(0)
    key, kx, kp = jax.random.split(key, 3)

    data = jax.random.normal(kx, (seq_len, batch, num_features), jnp.float32)
    hidden = (jnp.zeros((nlayers, batch, nhid), jnp.float32),   # init_hidden
              jnp.zeros((nlayers, batch, nhid), jnp.float32))
    params = init_params(kp, num_features, nhid, nlayers, num_class)
    prepared = prepare_params(params)                           # transpose once, not per call

    fwd = jax.jit(functools.partial(simple_lstm_forward, num_class=num_class))
    out, new_hidden = fwd(prepared, data, hidden)
    out = jax.block_until_ready(out)
    new_hidden = jax.block_until_ready(new_hidden)

    ref_out, ref_hidden = reference_forward(params, data, hidden, num_class)
    assert out.shape == (1, batch, num_class)
    assert new_hidden[0].shape == (nlayers, batch, nhid)
    assert new_hidden[1].shape == (nlayers, batch, nhid)
    assert jnp.allclose(out, ref_out, atol=1e-4, rtol=1e-4)
    assert jnp.allclose(new_hidden[0], ref_hidden[0], atol=1e-4, rtol=1e-4)
    assert jnp.allclose(new_hidden[1], ref_hidden[1], atol=1e-4, rtol=1e-4)

    print("KERNEL_OK")
</pallas_src>

<mosaic_0001>
module attributes {stable_mosaic.version = 11 : i64} {
  func.func @_fused_lstm_kernel(%arg0: memref<16x8xf32, #tpu.memory_space<vmem>>, %arg1: memref<2x2x32xf32, #tpu.memory_space<vmem>>, %arg2: memref<2x2x32xf32, #tpu.memory_space<vmem>>, %arg3: memref<8x128xf32, #tpu.memory_space<vmem>>, %arg4: memref<32x128xf32, #tpu.memory_space<vmem>>, %arg5: memref<1x128xf32, #tpu.memory_space<vmem>>, %arg6: memref<32x128xf32, #tpu.memory_space<vmem>>, %arg7: memref<32x128xf32, #tpu.memory_space<vmem>>, %arg8: memref<1x128xf32, #tpu.memory_space<vmem>>, %arg9: memref<32x4xf32, #tpu.memory_space<vmem>>, %arg10: memref<1x4xf32, #tpu.memory_space<vmem>>, %arg11: memref<2x4xf32, #tpu.memory_space<vmem>>, %arg12: memref<2x2x32xf32, #tpu.memory_space<vmem>>, %arg13: memref<2x2x32xf32, #tpu.memory_space<vmem>>, %arg14: memref<16x32xf32, #tpu.memory_space<vmem>>) attributes {dimension_semantics = [], scalar_prefetch = 0 : i64, scratch_operands = 1 : i64, tpu.core_type = #tpu.core_type<tc>} {
    %c0 = arith.constant 0 : index
    %c0_0 = arith.constant 0 : index
    %0 = vector.load %arg0[%c0, %c0_0] : memref<16x8xf32, #tpu.memory_space<vmem>>, vector<16x8xf32>
    %c0_1 = arith.constant 0 : index
    %c0_2 = arith.constant 0 : index
    %1 = vector.load %arg3[%c0_1, %c0_2] : memref<8x128xf32, #tpu.memory_space<vmem>>, vector<8x128xf32>
    %c0_3 = arith.constant 0 : index
    %c0_4 = arith.constant 0 : index
    %2 = vector.load %arg4[%c0_3, %c0_4] : memref<32x128xf32, #tpu.memory_space<vmem>>, vector<32x128xf32>
    %c0_5 = arith.constant 0 : index
    %c0_6 = arith.constant 0 : index
    %3 = vector.load %arg5[%c0_5, %c0_6] : memref<1x128xf32, #tpu.memory_space<vmem>>, vector<1x128xf32>
    %cst = arith.constant dense<0.000000e+00> : vector<16x128xf32>
    %4 = tpu.matmul %0, %1, %cst {dimension_numbers = #tpu.dot_dimension_numbers<[1], [0], [0], [1], [0, 0, 1, 1], [], []>} : vector<16x8xf32>, vector<8x128xf32>, vector<16x128xf32> -> vector<16x128xf32>
    %5 = vector.broadcast %3 : vector<1x128xf32> to vector<16x128xf32>
    %6 = arith.addf %4, %5 : vector<16x128xf32>
    %c0_7 = arith.constant 0 : index
    %c0_8 = arith.constant 0 : index
    %c0_9 = arith.constant 0 : index
    %7 = vector.load %arg1[%c0_7, %c0_8, %c0_9] : memref<2x2x32xf32, #tpu.memory_space<vmem>>, vector<1x2x32xf32>
    %8 = vector.shape_cast %7 : vector<1x2x32xf32> to vector<2x32xf32>
    %c0_10 = arith.constant 0 : index
    %c0_11 = arith.constant 0 : index
    %c0_12 = arith.constant 0 : index
    %9 = vector.load %arg2[%c0_10, %c0_11, %c0_12] : memref<2x2x32xf32, #tpu.memory_space<vmem>>, vector<1x2x32xf32>
    %10 = vector.shape_cast %9 : vector<1x2x32xf32> to vector<2x32xf32>
    %11 = vector.extract_strided_slice %6 {offsets = [0, 0], sizes = [2, 128], strides = [1, 1]} : vector<16x128xf32> to vector<2x128xf32>
    %cst_13 = arith.constant dense<0.000000e+00> : vector<2x128xf32>
    %12 = tpu.matmul %8, %2, %cst_13 {dimension_numbers = #tpu.dot_dimension_numbers<[1], [0], [0], [1], [0, 0, 1, 1], [], []>} : vector<2x32xf32>, vector<32x128xf32>, vector<2x128xf32> -> vector<2x128xf32>
    %13 = arith.addf %11, %12 : vector<2x128xf32>
    %14 = vector.extract_strided_slice %13 {offsets = [0, 0], sizes = [2, 32], strides = [1, 1]} : vector<2x128xf32> to vector<2x32xf32>
    %15 = arith.negf %14 : vector<2x32xf32>
    %16 = math.exp %15 : vector<2x32xf32>
    %cst_14 = arith.constant 1.000000e+00 : f32
    %17 = vector.broadcast %cst_14 : f32 to vector<2x32xf32>
    %18 = arith.addf %17, %16 : vector<2x32xf32>
    %19 = arith.divf %17, %18 : vector<2x32xf32>
    %20 = vector.extract_strided_slice %13 {offsets = [0, 32], sizes = [2, 32], strides = [1, 1]} : vector<2x128xf32> to vector<2x32xf32>
    %21 = arith.negf %20 : vector<2x32xf32>
    %22 = math.exp %21 : vector<2x32xf32>
    %cst_15 = arith.constant 1.000000e+00 : f32
    %23 = vector.broadcast %cst_15 : f32 to vector<2x32xf32>
    %24 = arith.addf %23, %22 : vector<2x32xf32>
    %25 = arith.divf %23, %24 : vector<2x32xf32>
    %26 = vector.extract_strided_slice %13 {offsets = [0, 64], sizes = [2, 32], strides = [1, 1]} : vector<2x128xf32> to vector<2x32xf32>
    %27 = math.tanh %26 : vector<2x32xf32>
    %28 = vector.extract_strided_slice %13 {offsets = [0, 96], sizes = [2, 32], strides = [1, 1]} : vector<2x128xf32> to vector<2x32xf32>
    %29 = arith.negf %28 : vector<2x32xf32>
    %30 = math.exp %29 : vector<2x32xf32>
    %cst_16 = arith.constant 1.000000e+00 : f32
    %31 = vector.broadcast %cst_16 : f32 to vector<2x32xf32>
    %32 = arith.addf %31, %30 : vector<2x32xf32>
    %33 = arith.divf %31, %32 : vector<2x32xf32>
    %34 = arith.mulf %25, %10 : vector<2x32xf32>
    %35 = arith.mulf %19, %27 : vector<2x32xf32>
    %36 = arith.addf %34, %35 : vector<2x32xf32>
    %37 = math.tanh %36 : vector<2x32xf32>
    %38 = arith.mulf %33, %37 : vector<2x32xf32>
    %c0_17 = arith.constant 0 : index
    %c0_18 = arith.constant 0 : index
    %39 = vector.load %arg14[%c0_17, %c0_18] : memref<16x32xf32, #tpu.memory_space<vmem>>, vector<2x32xf32>
    tpu.vector_store %arg14[%c0_17, %c0_18], %38 {strides = array<i32>} : memref<16x32xf32, #tpu.memory_space<vmem>>, vector<2x32xf32>,
    %40 = vector.extract_strided_slice %6 {offsets = [2, 0], sizes = [2, 128], strides = [1, 1]} : vector<16x128xf32> to vector<2x128xf32>
    %cst_19 = arith.constant dense<0.000000e+00> : vector<2x128xf32>
    %41 = tpu.matmul %38, %2, %cst_19 {dimension_numbers = #tpu.dot_dimension_numbers<[1], [0], [0], [1], [0, 0, 1, 1], [], []>} : vector<2x32xf32>, vector<32x128xf32>, vector<2x128xf32> -> vector<2x128xf32>
    %42 = arith.addf %40, %41 : vector<2x128xf32>
    %43 = vector.extract_strided_slice %42 {offsets = [0, 0], sizes = [2, 32], strides = [1, 1]} : vector<2x128xf32> to vector<2x32xf32>
    %44 = arith.negf %43 : vector<2x32xf32>
    %45 = math.exp %44 : vector<2x32xf32>
    %cst_20 = arith.constant 1.000000e+00 : f32
    %46 = vector.broadcast %cst_20 : f32 to vector<2x32xf32>
    %47 = arith.addf %46, %45 : vector<2x32xf32>
    %48 = arith.divf %46, %47 : vector<2x32xf32>
    %49 = vector.extract_strided_slice %42 {offsets = [0, 32], sizes = [2, 32], strides = [1, 1]} : vector<2x128xf32> to vector<2x32xf32>
    %50 = arith.negf %49 : vector<2x32xf32>
    %51 = math.exp %50 : vector<2x32xf32>
    %cst_21 = arith.constant 1.000000e+00 : f32
    %52 = vector.broadcast %cst_21 : f32 to vector<2x32xf32>
    %53 = arith.addf %52, %51 : vector<2x32xf32>
    %54 = arith.divf %52, %53 : vector<2x32xf32>
    %55 = vector.extract_strided_slice %42 {offsets = [0, 64], sizes = [2, 32], strides = [1, 1]} : vector<2x128xf32> to vector<2x32xf32>
    %56 = math.tanh %55 : vector<2x32xf32>
    %57 = vector.extract_strided_slice %42 {offsets = [0, 96], sizes = [2, 32], strides = [1, 1]} : vector<2x128xf32> to vector<2x32xf32>
    %58 = arith.negf %57 : vector<2x32xf32>
    %59 = math.exp %58 : vector<2x32xf32>
    %cst_22 = arith.constant 1.000000e+00 : f32
    %60 = vector.broadcast %cst_22 : f32 to vector<2x32xf32>
    %61 = arith.addf %60, %59 : vector<2x32xf32>
    %62 = arith.divf %60, %61 : vector<2x32xf32>
    %63 = arith.mulf %54, %36 : vector<2x32xf32>
    %64 = arith.mulf %48, %56 : vector<2x32xf32>
    %65 = arith.addf %63, %64 : vector<2x32xf32>
    %66 = math.tanh %65 : vector<2x32xf32>
    %67 = arith.mulf %62, %66 : vector<2x32xf32>
    %c2 = arith.constant 2 : index
    %c0_23 = arith.constant 0 : index
    %68 = vector.load %arg14[%c2, %c0_23] : memref<16x32xf32, #tpu.memory_space<vmem>>, vector<2x32xf32>
    tpu.vector_store %arg14[%c2, %c0_23], %67 {strides = array<i32>} : memref<16x32xf32, #tpu.memory_space<vmem>>, vector<2x32xf32>,
    %69 = vector.extract_strided_slice %6 {offsets = [4, 0], sizes = [2, 128], strides = [1, 1]} : vector<16x128xf32> to vector<2x128xf32>
    %cst_24 = arith.constant dense<0.000000e+00> : vector<2x128xf32>
    %70 = tpu.matmul %67, %2, %cst_24 {dimension_numbers = #tpu.dot_dimension_numbers<[1], [0], [0], [1], [0, 0, 1, 1], [], []>} : vector<2x32xf32>, vector<32x128xf32>, vector<2x128xf32> -> vector<2x128xf32>
    %71 = arith.addf %69, %70 : vector<2x128xf32>
    %72 = vector.extract_strided_slice %71 {offsets = [0, 0], sizes = [2, 32], strides = [1, 1]} : vector<2x128xf32> to vector<2x32xf32>
    %73 = arith.negf %72 : vector<2x32xf32>
    %74 = math.exp %73 : vector<2x32xf32>
    %cst_25 = arith.constant 1.000000e+00 : f32
    %75 = vector.broadcast %cst_25 : f32 to vector<2x32xf32>
    %76 = arith.addf %75, %74 : vector<2x32xf32>
    %77 = arith.divf %75, %76 : vector<2x32xf32>
    %78 = vector.extract_strided_slice %71 {offsets = [0, 32], sizes = [2, 32], strides = [1, 1]} : vector<2x128xf32> to vector<2x32xf32>
    %79 = arith.negf %78 : vector<2x32xf32>
    %80 = math.exp %79 : vector<2x32xf32>
    %cst_26 = arith.constant 1.000000e+00 : f32
    %81 = vector.broadcast %cst_26 : f32 to vector<2x32xf32>
    %82 = arith.addf %81, %80 : vector<2x32xf32>
    %83 = arith.divf %81, %82 : vector<2x32xf32>
    %84 = vector.extract_strided_slice %71 {offsets = [0, 64], sizes = [2, 32], strides = [1, 1]} : vector<2x128xf32> to vector<2x32xf32>
    %85 = math.tanh %84 : vector<2x32xf32>
    %86 = vector.extract_strided_slice %71 {offsets = [0, 96], sizes = [2, 32], strides = [1, 1]} : vector<2x128xf32> to vector<2x32xf32>
    %87 = arith.negf %86 : vector<2x32xf32>
    %88 = math.exp %87 : vector<2x32xf32>
    %cst_27 = arith.constant 1.000000e+00 : f32
    %89 = vector.broadcast %cst_27 : f32 to vector<2x32xf32>
    %90 = arith.addf %89, %88 : vector<2x32xf32>
    %91 = arith.divf %89, %90 : vector<2x32xf32>
    %92 = arith.mulf %83, %65 : vector<2x32xf32>
    %93 = arith.mulf %77, %85 : vector<2x32xf32>
    %94 = arith.addf %92, %93 : vector<2x32xf32>
    %95 = math.tanh %94 : vector<2x32xf32>
    %96 = arith.mulf %91, %95 : vector<2x32xf32>
    %c4 = arith.constant 4 : index
    %c0_28 = arith.constant 0 : index
    %97 = vector.load %arg14[%c4, %c0_28] : memref<16x32xf32, #tpu.memory_space<vmem>>, vector<2x32xf32>
    tpu.vector_store %arg14[%c4, %c0_28], %96 {strides = array<i32>} : memref<16x32xf32, #tpu.memory_space<vmem>>, vector<2x32xf32>,
    %98 = vector.extract_strided_slice %6 {offsets = [6, 0], sizes = [2, 128], strides = [1, 1]} : vector<16x128xf32> to vector<2x128xf32>
    %cst_29 = arith.constant dense<0.000000e+00> : vector<2x128xf32>
    %99 = tpu.matmul %96, %2, %cst_29 {dimension_numbers = #tpu.dot_dimension_numbers<[1], [0], [0], [1], [0, 0, 1, 1], [], []>} : vector<2x32xf32>, vector<32x128xf32>, vector<2x128xf32> -> vector<2x128xf32>
    %100 = arith.addf %98, %99 : vector<2x128xf32>
    %101 = vector.extract_strided_slice %100 {offsets = [0, 0], sizes = [2, 32], strides = [1, 1]} : vector<2x128xf32> to vector<2x32xf32>
    %102 = arith.negf %101 : vector<2x32xf32>
    %103 = math.exp %102 : vector<2x32xf32>
    %cst_30 = arith.constant 1.000000e+00 : f32
    %104 = vector.broadcast %cst_30 : f32 to vector<2x32xf32>
    %105 = arith.addf %104, %103 : vector<2x32xf32>
    %106 = arith.divf %104, %105 : vector<2x32xf32>
    %107 = vector.extract_strided_slice %100 {offsets = [0, 32], sizes = [2, 32], strides = [1, 1]} : vector<2x128xf32> to vector<2x32xf32>
    %108 = arith.negf %107 : vector<2x32xf32>
    %109 = math.exp %108 : vector<2x32xf32>
    %cst_31 = arith.constant 1.000000e+00 : f32
    %110 = vector.broadcast %cst_31 : f32 to vector<2x32xf32>
    %111 = arith.addf %110, %109 : vector<2x32xf32>
    %112 = arith.divf %110, %111 : vector<2x32xf32>
    %113 = vector.extract_strided_slice %100 {offsets = [0, 64], sizes = [2, 32], strides = [1, 1]} : vector<2x128xf32> to vector<2x32xf32>
    %114 = math.tanh %113 : vector<2x32xf32>
    %115 = vector.extract_strided_slice %100 {offsets = [0, 96], sizes = [2, 32], strides = [1, 1]} : vector<2x128xf32> to vector<2x32xf32>
    %116 = arith.negf %115 : vector<2x32xf32>
    %117 = math.exp %116 : vector<2x32xf32>
    %cst_32 = arith.constant 1.000000e+00 : f32
    %118 = vector.broadcast %cst_32 : f32 to vector<2x32xf32>
    %119 = arith.addf %118, %117 : vector<2x32xf32>
    %120 = arith.divf %118, %119 : vector<2x32xf32>
    %121 = arith.mulf %112, %94 : vector<2x32xf32>
    %122 = arith.mulf %106, %114 : vector<2x32xf32>
    %123 = arith.addf %121, %122 : vector<2x32xf32>
    %124 = math.tanh %123 : vector<2x32xf32>
    %125 = arith.mulf %120, %124 : vector<2x32xf32>
    %c6 = arith.constant 6 : index
    %c0_33 = arith.constant 0 : index
    %126 = vector.load %arg14[%c6, %c0_33] : memref<16x32xf32, #tpu.memory_space<vmem>>, vector<2x32xf32>
    tpu.vector_store %arg14[%c6, %c0_33], %125 {strides = array<i32>} : memref<16x32xf32, #tpu.memory_space<vmem>>, vector<2x32xf32>,
    %127 = vector.extract_strided_slice %6 {offsets = [8, 0], sizes = [2, 128], strides = [1, 1]} : vector<16x128xf32> to vector<2x128xf32>
    %cst_34 = arith.constant dense<0.000000e+00> : vector<2x128xf32>
    %128 = tpu.matmul %125, %2, %cst_34 {dimension_numbers = #tpu.dot_dimension_numbers<[1], [0], [0], [1], [0, 0, 1, 1], [], []>} : vector<2x32xf32>, vector<32x128xf32>, vector<2x128xf32> -> vector<2x128xf32>
    %129 = arith.addf %127, %128 : vector<2x128xf32>
    %130 = vector.extract_strided_slice %129 {offsets = [0, 0], sizes = [2, 32], strides = [1, 1]} : vector<2x128xf32> to vector<2x32xf32>
    %131 = arith.negf %130 : vector<2x32xf32>
    %132 = math.exp %131 : vector<2x32xf32>
    %cst_35 = arith.constant 1.000000e+00 : f32
    %133 = vector.broadcast %cst_35 : f32 to vector<2x32xf32>
    %134 = arith.addf %133, %132 : vector<2x32xf32>
    %135 = arith.divf %133, %134 : vector<2x32xf32>
    %136 = vector.extract_strided_slice %129 {offsets = [0, 32], sizes = [2, 32], strides = [1, 1]} : vector<2x128xf32> to vector<2x32xf32>
    %137 = arith.negf %136 : vector<2x32xf32>
    %138 = math.exp %137 : vector<2x32xf32>
    %cst_36 = arith.constant 1.000000e+00 : f32
    %139 = vector.broadcast %cst_36 : f32 to vector<2x32xf32>
    %140 = arith.addf %139, %138 : vector<2x32xf32>
    %141 = arith.divf %139, %140 : vector<2x32xf32>
    %142 = vector.extract_strided_slice %129 {offsets = [0, 64], sizes = [2, 32], strides = [1, 1]} : vector<2x128xf32> to vector<2x32xf32>
    %143 = math.tanh %142 : vector<2x32xf32>
    %144 = vector.extract_strided_slice %129 {offsets = [0, 96], sizes = [2, 32], strides = [1, 1]} : vector<2x128xf32> to vector<2x32xf32>
    %145 = arith.negf %144 : vector<2x32xf32>
    %146 = math.exp %145 : vector<2x32xf32>
    %cst_37 = arith.constant 1.000000e+00 : f32
    %147 = vector.broadcast %cst_37 : f32 to vector<2x32xf32>
    %148 = arith.addf %147, %146 : vector<2x32xf32>
    %149 = arith.divf %147, %148 : vector<2x32xf32>
    %150 = arith.mulf %141, %123 : vector<2x32xf32>
    %151 = arith.mulf %135, %143 : vector<2x32xf32>
    %152 = arith.addf %150, %151 : vector<2x32xf32>
    %153 = math.tanh %152 : vector<2x32xf32>
    %154 = arith.mulf %149, %153 : vector<2x32xf32>
    %c8 = arith.constant 8 : index
    %c0_38 = arith.constant 0 : index
    %155 = vector.load %arg14[%c8, %c0_38] : memref<16x32xf32, #tpu.memory_space<vmem>>, vector<2x32xf32>
    tpu.vector_store %arg14[%c8, %c0_38], %154 {strides = array<i32>} : memref<16x32xf32, #tpu.memory_space<vmem>>, vector<2x32xf32>,
    %156 = vector.extract_strided_slice %6 {offsets = [10, 0], sizes = [2, 128], strides = [1, 1]} : vector<16x128xf32> to vector<2x128xf32>
    %cst_39 = arith.constant dense<0.000000e+00> : vector<2x128xf32>
    %157 = tpu.matmul %154, %2, %cst_39 {dimension_numbers = #tpu.dot_dimension_numbers<[1], [0], [0], [1], [0, 0, 1, 1], [], []>} : vector<2x32xf32>, vector<32x128xf32>, vector<2x128xf32> -> vector<2x128xf32>
    %158 = arith.addf %156, %157 : vector<2x128xf32>
    %159 = vector.extract_strided_slice %158 {offsets = [0, 0], sizes = [2, 32], strides = [1, 1]} : vector<2x128xf32> to vector<2x32xf32>
    %160 = arith.negf %159 : vector<2x32xf32>
    %161 = math.exp %160 : vector<2x32xf32>
    %cst_40 = arith.constant 1.000000e+00 : f32
    %162 = vector.broadcast %cst_40 : f32 to vector<2x32xf32>
    %163 = arith.addf %162, %161 : vector<2x32xf32>
    %164 = arith.divf %162, %163 : vector<2x32xf32>
    %165 = vector.extract_strided_slice %158 {offsets = [0, 32], sizes = [2, 32], strides = [1, 1]} : vector<2x128xf32> to vector<2x32xf32>
    %166 = arith.negf %165 : vector<2x32xf32>
    %167 = math.exp %166 : vector<2x32xf32>
    %cst_41 = arith.constant 1.000000e+00 : f32
    %168 = vector.broadcast %cst_41 : f32 to vector<2x32xf32>
    %169 = arith.addf %168, %167 : vector<2x32xf32>
    %170 = arith.divf %168, %169 : vector<2x32xf32>
    %171 = vector.extract_strided_slice %158 {offsets = [0, 64], sizes = [2, 32], strides = [1, 1]} : vector<2x128xf32> to vector<2x32xf32>
    %172 = math.tanh %171 : vector<2x32xf32>
    %173 = vector.extract_strided_slice %158 {offsets = [0, 96], sizes = [2, 32], strides = [1, 1]} : vector<2x128xf32> to vector<2x32xf32>
    %174 = arith.negf %173 : vector<2x32xf32>
    %175 = math.exp %174 : vector<2x32xf32>
    %cst_42 = arith.constant 1.000000e+00 : f32
    %176 = vector.broadcast %cst_42 : f32 to vector<2x32xf32>
    %177 = arith.addf %176, %175 : vector<2x32xf32>
    %178 = arith.divf %176, %177 : vector<2x32xf32>
    %179 = arith.mulf %170, %152 : vector<2x32xf32>
    %180 = arith.mulf %164, %172 : vector<2x32xf32>
    %181 = arith.addf %179, %180 : vector<2x32xf32>
    %182 = math.tanh %181 : vector<2x32xf32>
    %183 = arith.mulf %178, %182 : vector<2x32xf32>
    %c10 = arith.constant 10 : index
    %c0_43 = arith.constant 0 : index
    %184 = vector.load %arg14[%c10, %c0_43] : memref<16x32xf32, #tpu.memory_space<vmem>>, vector<2x32xf32>
    tpu.vector_store %arg14[%c10, %c0_43], %183 {strides = array<i32>} : memref<16x32xf32, #tpu.memory_space<vmem>>, vector<2x32xf32>,
    %185 = vector.extract_strided_slice %6 {offsets = [12, 0], sizes = [2, 128], strides = [1, 1]} : vector<16x128xf32> to vector<2x128xf32>
    %cst_44 = arith.constant dense<0.000000e+00> : vector<2x128xf32>
    %186 = tpu.matmul %183, %2, %cst_44 {dimension_numbers = #tpu.dot_dimension_numbers<[1], [0], [0], [1], [0, 0, 1, 1], [], []>} : vector<2x32xf32>, vector<32x128xf32>, vector<2x128xf32> -> vector<2x128xf32>
    %187 = arith.addf %185, %186 : vector<2x128xf32>
    %188 = vector.extract_strided_slice %187 {offsets = [0, 0], sizes = [2, 32], strides = [1, 1]} : vector<2x128xf32> to vector<2x32xf32>
    %189 = arith.negf %188 : vector<2x32xf32>
    %190 = math.exp %189 : vector<2x32xf32>
    %cst_45 = arith.constant 1.000000e+00 : f32
    %191 = vector.broadcast %cst_45 : f32 to vector<2x32xf32>
    %192 = arith.addf %191, %190 : vector<2x32xf32>
    %193 = arith.divf %191, %192 : vector<2x32xf32>
    %194 = vector.extract_strided_slice %187 {offsets = [0, 32], sizes = [2, 32], strides = [1, 1]} : vector<2x128xf32> to vector<2x32xf32>
    %195 = arith.negf %194 : vector<2x32xf32>
    %196 = math.exp %195 : vector<2x32xf32>
    %cst_46 = arith.constant 1.000000e+00 : f32
    %197 = vector.broadcast %cst_46 : f32 to vector<2x32xf32>
    %198 = arith.addf %197, %196 : vector<2x32xf32>
    %199 = arith.divf %197, %198 : vector<2x32xf32>
    %200 = vector.extract_strided_slice %187 {offsets = [0, 64], sizes = [2, 32], strides = [1, 1]} : vector<2x128xf32> to vector<2x32xf32>
    %201 = math.tanh %200 : vector<2x32xf32>
    %202 = vector.extract_strided_slice %187 {offsets = [0, 96], sizes = [2, 32], strides = [1, 1]} : vector<2x128xf32> to vector<2x32xf32>
    %203 = arith.negf %202 : vector<2x32xf32>
    %204 = math.exp %203 : vector<2x32xf32>
    %cst_47 = arith.constant 1.000000e+00 : f32
    %205 = vector.broadcast %cst_47 : f32 to vector<2x32xf32>
    %206 = arith.addf %205, %204 : vector<2x32xf32>
    %207 = arith.divf %205, %206 : vector<2x32xf32>
    %208 = arith.mulf %199, %181 : vector<2x32xf32>
    %209 = arith.mulf %193, %201 : vector<2x32xf32>
    %210 = arith.addf %208, %209 : vector<2x32xf32>
    %211 = math.tanh %210 : vector<2x32xf32>
    %212 = arith.mulf %207, %211 : vector<2x32xf32>
    %c12 = arith.constant 12 : index
    %c0_48 = arith.constant 0 : index
    %213 = vector.load %arg14[%c12, %c0_48] : memref<16x32xf32, #tpu.memory_space<vmem>>, vector<2x32xf32>
    tpu.vector_store %arg14[%c12, %c0_48], %212 {strides = array<i32>} : memref<16x32xf32, #tpu.memory_space<vmem>>, vector<2x32xf32>,
    %214 = vector.extract_strided_slice %6 {offsets = [14, 0], sizes = [2, 128], strides = [1, 1]} : vector<16x128xf32> to vector<2x128xf32>
    %cst_49 = arith.constant dense<0.000000e+00> : vector<2x128xf32>
    %215 = tpu.matmul %212, %2, %cst_49 {dimension_numbers = #tpu.dot_dimension_numbers<[1], [0], [0], [1], [0, 0, 1, 1], [], []>} : vector<2x32xf32>, vector<32x128xf32>, vector<2x128xf32> -> vector<2x128xf32>
    %216 = arith.addf %214, %215 : vector<2x128xf32>
    %217 = vector.extract_strided_slice %216 {offsets = [0, 0], sizes = [2, 32], strides = [1, 1]} : vector<2x128xf32> to vector<2x32xf32>
    %218 = arith.negf %217 : vector<2x32xf32>
    %219 = math.exp %218 : vector<2x32xf32>
    %cst_50 = arith.constant 1.000000e+00 : f32
    %220 = vector.broadcast %cst_50 : f32 to vector<2x32xf32>
    %221 = arith.addf %220, %219 : vector<2x32xf32>
    %222 = arith.divf %220, %221 : vector<2x32xf32>
    %223 = vector.extract_strided_slice %216 {offsets = [0, 32], sizes = [2, 32], strides = [1, 1]} : vector<2x128xf32> to vector<2x32xf32>
    %224 = arith.negf %223 : vector<2x32xf32>
    %225 = math.exp %224 : vector<2x32xf32>
    %cst_51 = arith.constant 1.000000e+00 : f32
    %226 = vector.broadcast %cst_51 : f32 to vector<2x32xf32>
    %227 = arith.addf %226, %225 : vector<2x32xf32>
    %228 = arith.divf %226, %227 : vector<2x32xf32>
    %229 = vector.extract_strided_slice %216 {offsets = [0, 64], sizes = [2, 32], strides = [1, 1]} : vector<2x128xf32> to vector<2x32xf32>
    %230 = math.tanh %229 : vector<2x32xf32>
    %231 = vector.extract_strided_slice %216 {offsets = [0, 96], sizes = [2, 32], strides = [1, 1]} : vector<2x128xf32> to vector<2x32xf32>
    %232 = arith.negf %231 : vector<2x32xf32>
    %233 = math.exp %232 : vector<2x32xf32>
    %cst_52 = arith.constant 1.000000e+00 : f32
    %234 = vector.broadcast %cst_52 : f32 to vector<2x32xf32>
    %235 = arith.addf %234, %233 : vector<2x32xf32>
    %236 = arith.divf %234, %235 : vector<2x32xf32>
    %237 = arith.mulf %228, %210 : vector<2x32xf32>
    %238 = arith.mulf %222, %230 : vector<2x32xf32>
    %239 = arith.addf %237, %238 : vector<2x32xf32>
    %240 = math.tanh %239 : vector<2x32xf32>
    %241 = arith.mulf %236, %240 : vector<2x32xf32>
    %c14 = arith.constant 14 : index
    %c0_53 = arith.constant 0 : index
    %242 = vector.load %arg14[%c14, %c0_53] : memref<16x32xf32, #tpu.memory_space<vmem>>, vector<2x32xf32>
    tpu.vector_store %arg14[%c14, %c0_53], %241 {strides = array<i32>} : memref<16x32xf32, #tpu.memory_space<vmem>>, vector<2x32xf32>,
    %c0_54 = arith.constant 0 : index
    %c0_55 = arith.constant 0 : index
    %c0_56 = arith.constant 0 : index
    %243 = vector.load %arg12[%c0_54, %c0_55, %c0_56] : memref<2x2x32xf32, #tpu.memory_space<vmem>>, vector<1x2x32xf32>
    %244 = vector.shape_cast %243 : vector<1x2x32xf32> to vector<2x32xf32>
    %245 = vector.shape_cast %241 : vector<2x32xf32> to vector<1x2x32xf32>
    tpu.vector_store %arg12[%c0_54, %c0_55, %c0_56], %245 {strides = array<i32>} : memref<2x2x32xf32, #tpu.memory_space<vmem>>, vector<1x2x32xf32>,
    %c0_57 = arith.constant 0 : index
    %c0_58 = arith.constant 0 : index
    %c0_59 = arith.constant 0 : index
    %246 = vector.load %arg13[%c0_57, %c0_58, %c0_59] : memref<2x2x32xf32, #tpu.memory_space<vmem>>, vector<1x2x32xf32>
    %247 = vector.shape_cast %246 : vector<1x2x32xf32> to vector<2x32xf32>
    %248 = vector.shape_cast %239 : vector<2x32xf32> to vector<1x2x32xf32>
    tpu.vector_store %arg13[%c0_57, %c0_58, %c0_59], %248 {strides = array<i32>} : memref<2x2x32xf32, #tpu.memory_space<vmem>>, vector<1x2x32xf32>,
    %c0_60 = arith.constant 0 : index
    %c0_61 = arith.constant 0 : index
    %249 = vector.load %arg14[%c0_60, %c0_61] : memref<16x32xf32, #tpu.memory_space<vmem>>, vector<16x32xf32>
    %c0_62 = arith.constant 0 : index
    %c0_63 = arith.constant 0 : index
    %250 = vector.load %arg6[%c0_62, %c0_63] : memref<32x128xf32, #tpu.memory_space<vmem>>, vector<32x128xf32>
    %c0_64 = arith.constant 0 : index
    %c0_65 = arith.constant 0 : index
    %251 = vector.load %arg7[%c0_64, %c0_65] : memref<32x128xf32, #tpu.memory_space<vmem>>, vector<32x128xf32>
    %c0_66 = arith.constant 0 : index
    %c0_67 = arith.constant 0 : index
    %252 = vector.load %arg8[%c0_66, %c0_67] : memref<1x128xf32, #tpu.memory_space<vmem>>, vector<1x128xf32>
    %cst_68 = arith.constant dense<0.000000e+00> : vector<16x128xf32>
    %253 = tpu.matmul %249, %250, %cst_68 {dimension_numbers = #tpu.dot_dimension_numbers<[1], [0], [0], [1], [0, 0, 1, 1], [], []>} : vector<16x32xf32>, vector<32x128xf32>, vector<16x128xf32> -> vector<16x128xf32>
    %254 = vector.broadcast %252 : vector<1x128xf32> to vector<16x128xf32>
    %255 = arith.addf %253, %254 : vector<16x128xf32>
    %c1 = arith.constant 1 : index
    %c0_69 = arith.constant 0 : index
    %c0_70 = arith.constant 0 : index
    %256 = vector.load %arg1[%c1, %c0_69, %c0_70] : memref<2x2x32xf32, #tpu.memory_space<vmem>>, vector<1x2x32xf32>
    %257 = vector.shape_cast %256 : vector<1x2x32xf32> to vector<2x32xf32>
    %c1_71 = arith.constant 1 : index
    %c0_72 = arith.constant 0 : index
    %c0_73 = arith.constant 0 : index
    %258 = vector.load %arg2[%c1_71, %c0_72, %c0_73] : memref<2x2x32xf32, #tpu.memory_space<vmem>>, vector<1x2x32xf32>
    %259 = vector.shape_cast %258 : vector<1x2x32xf32> to vector<2x32xf32>
    %260 = vector.extract_strided_slice %255 {offsets = [0, 0], sizes = [2, 128], strides = [1, 1]} : vector<16x128xf32> to vector<2x128xf32>
    %cst_74 = arith.constant dense<0.000000e+00> : vector<2x128xf32>
    %261 = tpu.matmul %257, %251, %cst_74 {dimension_numbers = #tpu.dot_dimension_numbers<[1], [0], [0], [1], [0, 0, 1, 1], [], []>} : vector<2x32xf32>, vector<32x128xf32>, vector<2x128xf32> -> vector<2x128xf32>
    %262 = arith.addf %260, %261 : vector<2x128xf32>
    %263 = vector.extract_strided_slice %262 {offsets = [0, 0], sizes = [2, 32], strides = [1, 1]} : vector<2x128xf32> to vector<2x32xf32>
    %264 = arith.negf %263 : vector<2x32xf32>
    %265 = math.exp %264 : vector<2x32xf32>
    %cst_75 = arith.constant 1.000000e+00 : f32
    %266 = vector.broadcast %cst_75 : f32 to vector<2x32xf32>
    %267 = arith.addf %266, %265 : vector<2x32xf32>
    %268 = arith.divf %266, %267 : vector<2x32xf32>
    %269 = vector.extract_strided_slice %262 {offsets = [0, 32], sizes = [2, 32], strides = [1, 1]} : vector<2x128xf32> to vector<2x32xf32>
    %270 = arith.negf %269 : vector<2x32xf32>
    %271 = math.exp %270 : vector<2x32xf32>
    %cst_76 = arith.constant 1.000000e+00 : f32
    %272 = vector.broadcast %cst_76 : f32 to vector<2x32xf32>
    %273 = arith.addf %272, %271 : vector<2x32xf32>
    %274 = arith.divf %272, %273 : vector<2x32xf32>
    %275 = vector.extract_strided_slice %262 {offsets = [0, 64], sizes = [2, 32], strides = [1, 1]} : vector<2x128xf32> to vector<2x32xf32>
    %276 = math.tanh %275 : vector<2x32xf32>
    %277 = vector.extract_strided_slice %262 {offsets = [0, 96], sizes = [2, 32], strides = [1, 1]} : vector<2x128xf32> to vector<2x32xf32>
    %278 = arith.negf %277 : vector<2x32xf32>
    %279 = math.exp %278 : vector<2x32xf32>
    %cst_77 = arith.constant 1.000000e+00 : f32
    %280 = vector.broadcast %cst_77 : f32 to vector<2x32xf32>
    %281 = arith.addf %280, %279 : vector<2x32xf32>
    %282 = arith.divf %280, %281 : vector<2x32xf32>
    %283 = arith.mulf %274, %259 : vector<2x32xf32>
    %284 = arith.mulf %268, %276 : vector<2x32xf32>
    %285 = arith.addf %283, %284 : vector<2x32xf32>
    %286 = math.tanh %285 : vector<2x32xf32>
    %287 = arith.mulf %282, %286 : vector<2x32xf32>
    %288 = vector.extract_strided_slice %255 {offsets = [2, 0], sizes = [2, 128], strides = [1, 1]} : vector<16x128xf32> to vector<2x128xf32>
    %cst_78 = arith.constant dense<0.000000e+00> : vector<2x128xf32>
    %289 = tpu.matmul %287, %251, %cst_78 {dimension_numbers = #tpu.dot_dimension_numbers<[1], [0], [0], [1], [0, 0, 1, 1], [], []>} : vector<2x32xf32>, vector<32x128xf32>, vector<2x128xf32> -> vector<2x128xf32>
    %290 = arith.addf %288, %289 : vector<2x128xf32>
    %291 = vector.extract_strided_slice %290 {offsets = [0, 0], sizes = [2, 32], strides = [1, 1]} : vector<2x128xf32> to vector<2x32xf32>
    %292 = arith.negf %291 : vector<2x32xf32>
    %293 = math.exp %292 : vector<2x32xf32>
    %cst_79 = arith.constant 1.000000e+00 : f32
    %294 = vector.broadcast %cst_79 : f32 to vector<2x32xf32>
    %295 = arith.addf %294, %293 : vector<2x32xf32>
    %296 = arith.divf %294, %295 : vector<2x32xf32>
    %297 = vector.extract_strided_slice %290 {offsets = [0, 32], sizes = [2, 32], strides = [1, 1]} : vector<2x128xf32> to vector<2x32xf32>
    %298 = arith.negf %297 : vector<2x32xf32>
    %299 = math.exp %298 : vector<2x32xf32>
    %cst_80 = arith.constant 1.000000e+00 : f32
    %300 = vector.broadcast %cst_80 : f32 to vector<2x32xf32>
    %301 = arith.addf %300, %299 : vector<2x32xf32>
    %302 = arith.divf %300, %301 : vector<2x32xf32>
    %303 = vector.extract_strided_slice %290 {offsets = [0, 64], sizes = [2, 32], strides = [1, 1]} : vector<2x128xf32> to vector<2x32xf32>
    %304 = math.tanh %303 : vector<2x32xf32>
    %305 = vector.extract_strided_slice %290 {offsets = [0, 96], sizes = [2, 32], strides = [1, 1]} : vector<2x128xf32> to vector<2x32xf32>
    %306 = arith.negf %305 : vector<2x32xf32>
    %307 = math.exp %306 : vector<2x32xf32>
    %cst_81 = arith.constant 1.000000e+00 : f32
    %308 = vector.broadcast %cst_81 : f32 to vector<2x32xf32>
    %309 = arith.addf %308, %307 : vector<2x32xf32>
    %310 = arith.divf %308, %309 : vector<2x32xf32>
    %311 = arith.mulf %302, %285 : vector<2x32xf32>
    %312 = arith.mulf %296, %304 : vector<2x32xf32>
    %313 = arith.addf %311, %312 : vector<2x32xf32>
    %314 = math.tanh %313 : vector<2x32xf32>
    %315 = arith.mulf %310, %314 : vector<2x32xf32>
    %316 = vector.extract_strided_slice %255 {offsets = [4, 0], sizes = [2, 128], strides = [1, 1]} : vector<16x128xf32> to vector<2x128xf32>
    %cst_82 = arith.constant dense<0.000000e+00> : vector<2x128xf32>
    %317 = tpu.matmul %315, %251, %cst_82 {dimension_numbers = #tpu.dot_dimension_numbers<[1], [0], [0], [1], [0, 0, 1, 1], [], []>} : vector<2x32xf32>, vector<32x128xf32>, vector<2x128xf32> -> vector<2x128xf32>
    %318 = arith.addf %316, %317 : vector<2x128xf32>
    %319 = vector.extract_strided_slice %318 {offsets = [0, 0], sizes = [2, 32], strides = [1, 1]} : vector<2x128xf32> to vector<2x32xf32>
    %320 = arith.negf %319 : vector<2x32xf32>
    %321 = math.exp %320 : vector<2x32xf32>
    %cst_83 = arith.constant 1.000000e+00 : f32
    %322 = vector.broadcast %cst_83 : f32 to vector<2x32xf32>
    %323 = arith.addf %322, %321 : vector<2x32xf32>
    %324 = arith.divf %322, %323 : vector<2x32xf32>
    %325 = vector.extract_strided_slice %318 {offsets = [0, 32], sizes = [2, 32], strides = [1, 1]} : vector<2x128xf32> to vector<2x32xf32>
    %326 = arith.negf %325 : vector<2x32xf32>
    %327 = math.exp %326 : vector<2x32xf32>
    %cst_84 = arith.constant 1.000000e+00 : f32
    %328 = vector.broadcast %cst_84 : f32 to vector<2x32xf32>
    %329 = arith.addf %328, %327 : vector<2x32xf32>
    %330 = arith.divf %328, %329 : vector<2x32xf32>
    %331 = vector.extract_strided_slice %318 {offsets = [0, 64], sizes = [2, 32], strides = [1, 1]} : vector<2x128xf32> to vector<2x32xf32>
    %332 = math.tanh %331 : vector<2x32xf32>
    %333 = vector.extract_strided_slice %318 {offsets = [0, 96], sizes = [2, 32], strides = [1, 1]} : vector<2x128xf32> to vector<2x32xf32>
    %334 = arith.negf %333 : vector<2x32xf32>
    %335 = math.exp %334 : vector<2x32xf32>
    %cst_85 = arith.constant 1.000000e+00 : f32
    %336 = vector.broadcast %cst_85 : f32 to vector<2x32xf32>
    %337 = arith.addf %336, %335 : vector<2x32xf32>
    %338 = arith.divf %336, %337 : vector<2x32xf32>
    %339 = arith.mulf %330, %313 : vector<2x32xf32>
    %340 = arith.mulf %324, %332 : vector<2x32xf32>
    %341 = arith.addf %339, %340 : vector<2x32xf32>
    %342 = math.tanh %341 : vector<2x32xf32>
    %343 = arith.mulf %338, %342 : vector<2x32xf32>
    %344 = vector.extract_strided_slice %255 {offsets = [6, 0], sizes = [2, 128], strides = [1, 1]} : vector<16x128xf32> to vector<2x128xf32>
    %cst_86 = arith.constant dense<0.000000e+00> : vector<2x128xf32>
    %345 = tpu.matmul %343, %251, %cst_86 {dimension_numbers = #tpu.dot_dimension_numbers<[1], [0], [0], [1], [0, 0, 1, 1], [], []>} : vector<2x32xf32>, vector<32x128xf32>, vector<2x128xf32> -> vector<2x128xf32>
    %346 = arith.addf %344, %345 : vector<2x128xf32>
    %347 = vector.extract_strided_slice %346 {offsets = [0, 0], sizes = [2, 32], strides = [1, 1]} : vector<2x128xf32> to vector<2x32xf32>
    %348 = arith.negf %347 : vector<2x32xf32>
    %349 = math.exp %348 : vector<2x32xf32>
    %cst_87 = arith.constant 1.000000e+00 : f32
    %350 = vector.broadcast %cst_87 : f32 to vector<2x32xf32>
    %351 = arith.addf %350, %349 : vector<2x32xf32>
    %352 = arith.divf %350, %351 : vector<2x32xf32>
    %353 = vector.extract_strided_slice %346 {offsets = [0, 32], sizes = [2, 32], strides = [1, 1]} : vector<2x128xf32> to vector<2x32xf32>
    %354 = arith.negf %353 : vector<2x32xf32>
    %355 = math.exp %354 : vector<2x32xf32>
    %cst_88 = arith.constant 1.000000e+00 : f32
    %356 = vector.broadcast %cst_88 : f32 to vector<2x32xf32>
    %357 = arith.addf %356, %355 : vector<2x32xf32>
    %358 = arith.divf %356, %357 : vector<2x32xf32>
    %359 = vector.extract_strided_slice %346 {offsets = [0, 64], sizes = [2, 32], strides = [1, 1]} : vector<2x128xf32> to vector<2x32xf32>
    %360 = math.tanh %359 : vector<2x32xf32>
    %361 = vector.extract_strided_slice %346 {offsets = [0, 96], sizes = [2, 32], strides = [1, 1]} : vector<2x128xf32> to vector<2x32xf32>
    %362 = arith.negf %361 : vector<2x32xf32>
    %363 = math.exp %362 : vector<2x32xf32>
    %cst_89 = arith.constant 1.000000e+00 : f32
    %364 = vector.broadcast %cst_89 : f32 to vector<2x32xf32>
    %365 = arith.addf %364, %363 : vector<2x32xf32>
    %366 = arith.divf %364, %365 : vector<2x32xf32>
    %367 = arith.mulf %358, %341 : vector<2x32xf32>
    %368 = arith.mulf %352, %360 : vector<2x32xf32>
    %369 = arith.addf %367, %368 : vector<2x32xf32>
    %370 = math.tanh %369 : vector<2x32xf32>
    %371 = arith.mulf %366, %370 : vector<2x32xf32>
    %372 = vector.extract_strided_slice %255 {offsets = [8, 0], sizes = [2, 128], strides = [1, 1]} : vector<16x128xf32> to vector<2x128xf32>
    %cst_90 = arith.constant dense<0.000000e+00> : vector<2x128xf32>
    %373 = tpu.matmul %371, %251, %cst_90 {dimension_numbers = #tpu.dot_dimension_numbers<[1], [0], [0], [1], [0, 0, 1, 1], [], []>} : vector<2x32xf32>, vector<32x128xf32>, vector<2x128xf32> -> vector<2x128xf32>
    %374 = arith.addf %372, %373 : vector<2x128xf32>
    %375 = vector.extract_strided_slice %374 {offsets = [0, 0], sizes = [2, 32], strides = [1, 1]} : vector<2x128xf32> to vector<2x32xf32>
    %376 = arith.negf %375 : vector<2x32xf32>
    %377 = math.exp %376 : vector<2x32xf32>
    %cst_91 = arith.constant 1.000000e+00 : f32
    %378 = vector.broadcast %cst_91 : f32 to vector<2x32xf32>
    %379 = arith.addf %378, %377 : vector<2x32xf32>
    %380 = arith.divf %378, %379 : vector<2x32xf32>
    %381 = vector.extract_strided_slice %374 {offsets = [0, 32], sizes = [2, 32], strides = [1, 1]} : vector<2x128xf32> to vector<2x32xf32>
    %382 = arith.negf %381 : vector<2x32xf32>
    %383 = math.exp %382 : vector<2x32xf32>
    %cst_92 = arith.constant 1.000000e+00 : f32
    %384 = vector.broadcast %cst_92 : f32 to vector<2x32xf32>
    %385 = arith.addf %384, %383 : vector<2x32xf32>
    %386 = arith.divf %384, %385 : vector<2x32xf32>
    %387 = vector.extract_strided_slice %374 {offsets = [0, 64], sizes = [2, 32], strides = [1, 1]} : vector<2x128xf32> to vector<2x32xf32>
    %388 = math.tanh %387 : vector<2x32xf32>
    %389 = vector.extract_strided_slice %374 {offsets = [0, 96], sizes = [2, 32], strides = [1, 1]} : vector<2x128xf32> to vector<2x32xf32>
    %390 = arith.negf %389 : vector<2x32xf32>
    %391 = math.exp %390 : vector<2x32xf32>
    %cst_93 = arith.constant 1.000000e+00 : f32
    %392 = vector.broadcast %cst_93 : f32 to vector<2x32xf32>
    %393 = arith.addf %392, %391 : vector<2x32xf32>
    %394 = arith.divf %392, %393 : vector<2x32xf32>
    %395 = arith.mulf %386, %369 : vector<2x32xf32>
    %396 = arith.mulf %380, %388 : vector<2x32xf32>
    %397 = arith.addf %395, %396 : vector<2x32xf32>
    %398 = math.tanh %397 : vector<2x32xf32>
    %399 = arith.mulf %394, %398 : vector<2x32xf32>
    %400 = vector.extract_strided_slice %255 {offsets = [10, 0], sizes = [2, 128], strides = [1, 1]} : vector<16x128xf32> to vector<2x128xf32>
    %cst_94 = arith.constant dense<0.000000e+00> : vector<2x128xf32>
    %401 = tpu.matmul %399, %251, %cst_94 {dimension_numbers = #tpu.dot_dimension_numbers<[1], [0], [0], [1], [0, 0, 1, 1], [], []>} : vector<2x32xf32>, vector<32x128xf32>, vector<2x128xf32> -> vector<2x128xf32>
    %402 = arith.addf %400, %401 : vector<2x128xf32>
    %403 = vector.extract_strided_slice %402 {offsets = [0, 0], sizes = [2, 32], strides = [1, 1]} : vector<2x128xf32> to vector<2x32xf32>
    %404 = arith.negf %403 : vector<2x32xf32>
    %405 = math.exp %404 : vector<2x32xf32>
    %cst_95 = arith.constant 1.000000e+00 : f32
    %406 = vector.broadcast %cst_95 : f32 to vector<2x32xf32>
    %407 = arith.addf %406, %405 : vector<2x32xf32>
    %408 = arith.divf %406, %407 : vector<2x32xf32>
    %409 = vector.extract_strided_slice %402 {offsets = [0, 32], sizes = [2, 32], strides = [1, 1]} : vector<2x128xf32> to vector<2x32xf32>
    %410 = arith.negf %409 : vector<2x32xf32>
    %411 = math.exp %410 : vector<2x32xf32>
    %cst_96 = arith.constant 1.000000e+00 : f32
    %412 = vector.broadcast %cst_96 : f32 to vector<2x32xf32>
    %413 = arith.addf %412, %411 : vector<2x32xf32>
    %414 = arith.divf %412, %413 : vector<2x32xf32>
    %415 = vector.extract_strided_slice %402 {offsets = [0, 64], sizes = [2, 32], strides = [1, 1]} : vector<2x128xf32> to vector<2x32xf32>
    %416 = math.tanh %415 : vector<2x32xf32>
    %417 = vector.extract_strided_slice %402 {offsets = [0, 96], sizes = [2, 32], strides = [1, 1]} : vector<2x128xf32> to vector<2x32xf32>
    %418 = arith.negf %417 : vector<2x32xf32>
    %419 = math.exp %418 : vector<2x32xf32>
    %cst_97 = arith.constant 1.000000e+00 : f32
    %420 = vector.broadcast %cst_97 : f32 to vector<2x32xf32>
    %421 = arith.addf %420, %419 : vector<2x32xf32>
    %422 = arith.divf %420, %421 : vector<2x32xf32>
    %423 = arith.mulf %414, %397 : vector<2x32xf32>
    %424 = arith.mulf %408, %416 : vector<2x32xf32>
    %425 = arith.addf %423, %424 : vector<2x32xf32>
    %426 = math.tanh %425 : vector<2x32xf32>
    %427 = arith.mulf %422, %426 : vector<2x32xf32>
    %428 = vector.extract_strided_slice %255 {offsets = [12, 0], sizes = [2, 128], strides = [1, 1]} : vector<16x128xf32> to vector<2x128xf32>
    %cst_98 = arith.constant dense<0.000000e+00> : vector<2x128xf32>
    %429 = tpu.matmul %427, %251, %cst_98 {dimension_numbers = #tpu.dot_dimension_numbers<[1], [0], [0], [1], [0, 0, 1, 1], [], []>} : vector<2x32xf32>, vector<32x128xf32>, vector<2x128xf32> -> vector<2x128xf32>
    %430 = arith.addf %428, %429 : vector<2x128xf32>
    %431 = vector.extract_strided_slice %430 {offsets = [0, 0], sizes = [2, 32], strides = [1, 1]} : vector<2x128xf32> to vector<2x32xf32>
    %432 = arith.negf %431 : vector<2x32xf32>
    %433 = math.exp %432 : vector<2x32xf32>
    %cst_99 = arith.constant 1.000000e+00 : f32
    %434 = vector.broadcast %cst_99 : f32 to vector<2x32xf32>
    %435 = arith.addf %434, %433 : vector<2x32xf32>
    %436 = arith.divf %434, %435 : vector<2x32xf32>
    %437 = vector.extract_strided_slice %430 {offsets = [0, 32], sizes = [2, 32], strides = [1, 1]} : vector<2x128xf32> to vector<2x32xf32>
    %438 = arith.negf %437 : vector<2x32xf32>
    %439 = math.exp %438 : vector<2x32xf32>
    %cst_100 = arith.constant 1.000000e+00 : f32
    %440 = vector.broadcast %cst_100 : f32 to vector<2x32xf32>
    %441 = arith.addf %440, %439 : vector<2x32xf32>
    %442 = arith.divf %440, %441 : vector<2x32xf32>
    %443 = vector.extract_strided_slice %430 {offsets = [0, 64], sizes = [2, 32], strides = [1, 1]} : vector<2x128xf32> to vector<2x32xf32>
    %444 = math.tanh %443 : vector<2x32xf32>
    %445 = vector.extract_strided_slice %430 {offsets = [0, 96], sizes = [2, 32], strides = [1, 1]} : vector<2x128xf32> to vector<2x32xf32>
    %446 = arith.negf %445 : vector<2x32xf32>
    %447 = math.exp %446 : vector<2x32xf32>
    %cst_101 = arith.constant 1.000000e+00 : f32
    %448 = vector.broadcast %cst_101 : f32 to vector<2x32xf32>
    %449 = arith.addf %448, %447 : vector<2x32xf32>
    %450 = arith.divf %448, %449 : vector<2x32xf32>
    %451 = arith.mulf %442, %425 : vector<2x32xf32>
    %452 = arith.mulf %436, %444 : vector<2x32xf32>
    %453 = arith.addf %451, %452 : vector<2x32xf32>
    %454 = math.tanh %453 : vector<2x32xf32>
    %455 = arith.mulf %450, %454 : vector<2x32xf32>
    %456 = vector.extract_strided_slice %255 {offsets = [14, 0], sizes = [2, 128], strides = [1, 1]} : vector<16x128xf32> to vector<2x128xf32>
    %cst_102 = arith.constant dense<0.000000e+00> : vector<2x128xf32>
    %457 = tpu.matmul %455, %251, %cst_102 {dimension_numbers = #tpu.dot_dimension_numbers<[1], [0], [0], [1], [0, 0, 1, 1], [], []>} : vector<2x32xf32>, vector<32x128xf32>, vector<2x128xf32> -> vector<2x128xf32>
    %458 = arith.addf %456, %457 : vector<2x128xf32>
    %459 = vector.extract_strided_slice %458 {offsets = [0, 0], sizes = [2, 32], strides = [1, 1]} : vector<2x128xf32> to vector<2x32xf32>
    %460 = arith.negf %459 : vector<2x32xf32>
    %461 = math.exp %460 : vector<2x32xf32>
    %cst_103 = arith.constant 1.000000e+00 : f32
    %462 = vector.broadcast %cst_103 : f32 to vector<2x32xf32>
    %463 = arith.addf %462, %461 : vector<2x32xf32>
    %464 = arith.divf %462, %463 : vector<2x32xf32>
    %465 = vector.extract_strided_slice %458 {offsets = [0, 32], sizes = [2, 32], strides = [1, 1]} : vector<2x128xf32> to vector<2x32xf32>
    %466 = arith.negf %465 : vector<2x32xf32>
    %467 = math.exp %466 : vector<2x32xf32>
    %cst_104 = arith.constant 1.000000e+00 : f32
    %468 = vector.broadcast %cst_104 : f32 to vector<2x32xf32>
    %469 = arith.addf %468, %467 : vector<2x32xf32>
    %470 = arith.divf %468, %469 : vector<2x32xf32>
    %471 = vector.extract_strided_slice %458 {offsets = [0, 64], sizes = [2, 32], strides = [1, 1]} : vector<2x128xf32> to vector<2x32xf32>
    %472 = math.tanh %471 : vector<2x32xf32>
    %473 = vector.extract_strided_slice %458 {offsets = [0, 96], sizes = [2, 32], strides = [1, 1]} : vector<2x128xf32> to vector<2x32xf32>
    %474 = arith.negf %473 : vector<2x32xf32>
    %475 = math.exp %474 : vector<2x32xf32>
    %cst_105 = arith.constant 1.000000e+00 : f32
    %476 = vector.broadcast %cst_105 : f32 to vector<2x32xf32>
    %477 = arith.addf %476, %475 : vector<2x32xf32>
    %478 = arith.divf %476, %477 : vector<2x32xf32>
    %479 = arith.mulf %470, %453 : vector<2x32xf32>
    %480 = arith.mulf %464, %472 : vector<2x32xf32>
    %481 = arith.addf %479, %480 : vector<2x32xf32>
    %482 = math.tanh %481 : vector<2x32xf32>
    %483 = arith.mulf %478, %482 : vector<2x32xf32>
    %c1_106 = arith.constant 1 : index
    %c0_107 = arith.constant 0 : index
    %c0_108 = arith.constant 0 : index
    %484 = vector.load %arg12[%c1_106, %c0_107, %c0_108] : memref<2x2x32xf32, #tpu.memory_space<vmem>>, vector<1x2x32xf32>
    %485 = vector.shape_cast %484 : vector<1x2x32xf32> to vector<2x32xf32>
    %486 = vector.shape_cast %483 : vector<2x32xf32> to vector<1x2x32xf32>
    tpu.vector_store %arg12[%c1_106, %c0_107, %c0_108], %486 {strides = array<i32>} : memref<2x2x32xf32, #tpu.memory_space<vmem>>, vector<1x2x32xf32>,
    %c1_109 = arith.constant 1 : index
    %c0_110 = arith.constant 0 : index
    %c0_111 = arith.constant 0 : index
    %487 = vector.load %arg13[%c1_109, %c0_110, %c0_111] : memref<2x2x32xf32, #tpu.memory_space<vmem>>, vector<1x2x32xf32>
    %488 = vector.shape_cast %487 : vector<1x2x32xf32> to vector<2x32xf32>
    %489 = vector.shape_cast %481 : vector<2x32xf32> to vector<1x2x32xf32>
    tpu.vector_store %arg13[%c1_109, %c0_110, %c0_111], %489 {strides = array<i32>} : memref<2x2x32xf32, #tpu.memory_space<vmem>>, vector<1x2x32xf32>,
    %c0_112 = arith.constant 0 : index
    %c0_113 = arith.constant 0 : index
    %490 = vector.load %arg9[%c0_112, %c0_113] : memref<32x4xf32, #tpu.memory_space<vmem>>, vector<32x4xf32>
    %cst_114 = arith.constant dense<0.000000e+00> : vector<2x4xf32>
    %491 = tpu.matmul %483, %490, %cst_114 {dimension_numbers = #tpu.dot_dimension_numbers<[1], [0], [0], [1], [0, 0, 1, 1], [], []>} : vector<2x32xf32>, vector<32x4xf32>, vector<2x4xf32> -> vector<2x4xf32>
    %c0_115 = arith.constant 0 : index
    %c0_116 = arith.constant 0 : index
    %492 = vector.load %arg10[%c0_115, %c0_116] : memref<1x4xf32, #tpu.memory_space<vmem>>, vector<1x4xf32>
    %493 = vector.broadcast %492 : vector<1x4xf32> to vector<2x4xf32>
    %494 = arith.addf %491, %493 : vector<2x4xf32>
    %c0_117 = arith.constant 0 : index
    %c0_118 = arith.constant 0 : index
    %495 = vector.load %arg11[%c0_117, %c0_118] : memref<2x4xf32, #tpu.memory_space<vmem>>, vector<2x4xf32>
    tpu.vector_store %arg11[%c0_117, %c0_118], %494 {strides = array<i32>} : memref<2x4xf32, #tpu.memory_space<vmem>>, vector<2x4xf32>,
    return
  }
}

</mosaic_0001>

<bundles_post_ra>
// kernel: simple_lstm_forward.1
= control target key start
LH: loop header
LB: loop body
LE: loop exit
PB: predicated region body
PF: predicated region fallthrough
CT: control target
= control target key end

     0   :  { %19 = vsyncpa [#allocation4], 0  ;;  %s2248_s0 = inlined_call_operand.hbm [shape: f32[16,8], index: 0, kind: input, shape index: {}]   ;;  %s2249_s1 = inlined_call_operand.vmem [shape: f32[2,2,32], index: 1, kind: input, shape index: {}]   ;;  %s2250_s2 = inlined_call_operand.vmem [shape: f32[2,2,32], index: 2, kind: input, shape index: {}]   ;;  %s2251_s3 = inlined_call_operand.hbm [shape: f32[8,128], index: 3, kind: input, shape index: {}]   ;;  %s2252_s4 = inlined_call_operand.vmem [shape: f32[32,128], index: 4, kind: input, shape index: {}]   ;;  %s2253_s5 = inlined_call_operand.hbm [shape: f32[1,128], index: 5, kind: input, shape index: {}]   ;;  %s2254_s6 = inlined_call_operand.hbm [shape: f32[32,128], index: 6, kind: input, shape index: {}]   ;;  %s2255_s7 = inlined_call_operand.hbm [shape: f32[32,128], index: 7, kind: input, shape index: {}]   ;;  %s2256_s8 = inlined_call_operand.vmem [shape: f32[1,128], index: 8, kind: input, shape index: {}]   ;;  %s2257_s9 = inlined_call_operand.vmem [shape: f32[32,4], index: 9, kind: input, shape index: {}]   ;;  %s2258_s10 = inlined_call_operand.hbm [shape: f32[1,4], index: 10, kind: input, shape index: {}]   ;;  %s2259_s11 = inlined_call_operand.hbm [shape: f32[2,4], index: 11, kind: output, shape index: {0}]   ;;  %s2260_s12 = inlined_call_operand.hbm [shape: f32[2,2,32], index: 12, kind: output, shape index: {1}]   ;;  %s2261_s13 = inlined_call_operand.hbm [shape: f32[2,2,32], index: 13, kind: output, shape index: {2}]  }
   0x1   :  { %20 = vsyncpa [#allocation7], 0 }
   0x2   :  { %21 = vsyncpa [#allocation10], 0 }
   0x3   :  { %22 = vsyncpa [#allocation13], 0 }
   0x4   :  { %23 = vsyncpa [#allocation5], 0  ;;  %s47_s27 = sshll.u32 %s2251_s3, 4  ;;  %s48_s27 = int_to_ptr.hbm [resolvable:$true] %s47_s27 }
   0x5   :  { %24 = vsyncpa [#allocation16], 0  ;;  %s1876_s28 = smov [#allocation6]   ;;  %s70_s15 = sshll.u32 %s2254_s6, 4  ;;  %s71_s15 = int_to_ptr.hbm [resolvable:$true] %s70_s15 }
   0x6   :  { %s49_s29 = sshll.u32 %s1876_s28, 4  ;;  %s1877_s16 = smov [#allocation9]   ;;  %s50_s29 = int_to_ptr.vmem [resolvable:$true] %s49_s29 }
   0x7   :  { %52 = dma.hbm_to_vmem [thread:$0]  %s48_s27, 128, %s50_s29, [#allocation7]  }
   0x8   :  { %s72_s17 = sshll.u32 %s1877_s16, 4  ;;  %s29_s20 = sshll.u32 %s2248_s0, 4  ;;  %s73_s17 = int_to_ptr.vmem [resolvable:$true] %s72_s17  ;;  %s30_s20 = int_to_ptr.hbm [resolvable:$true] %s29_s20 }
   0x9   :  { %s1878_s3 = smov 128   ;;  %s1879_s21 = smov 8  }
   0xa   :  { %78 = dma.hbm_to_vmem [thread:$0]  %s71_s15, 512, %s73_s17, [#allocation10], %s1878_s3, %s1878_s3, %s1879_s21  }
   0xb   :  { %s60_s24 = sshll.u32 %s2253_s5, 4  ;;  %s1880_s25 = smov [#allocation3]   ;;  %s61_s24 = int_to_ptr.hbm [resolvable:$true] %s60_s24 }
   0xc   :  { %s31_s26 = sshll.u32 %s1880_s25, 4  ;;  %s1881_s6 = smov [#allocation8]   ;;  %s32_s26 = int_to_ptr.vmem [resolvable:$true] %s31_s26 }
   0xd   :  { %37 = dma.hbm_to_vmem [thread:$0]  %s30_s20, 256, %s32_s26, [#allocation4], %s1878_s3, %s1878_s3, %s1879_s21  }
   0xe   :  { %s62_s27 = sshll.u32 %s1881_s6, 4  ;;  %s83_s0 = sshll.u32 %s2255_s7, 4  ;;  %s63_s27 = int_to_ptr.vmem [resolvable:$true] %s62_s27  ;;  %s84_s0 = int_to_ptr.hbm [resolvable:$true] %s83_s0 }
   0xf   :  { %65 = dma.hbm_to_vmem [thread:$0]  %s61_s24, 16, %s63_s27, [#allocation7]  }
  0x10   :  { %s101_s15 = sshll.u32 %s2258_s10, 4  ;;  %s1882_s16 = smov [#allocation11]   ;;  %s102_s15 = int_to_ptr.hbm [resolvable:$true] %s101_s15 }
  0x11   :  { %s85_s5 = sshll.u32 %s1882_s16, 4  ;;  %s1883_s17 = smov [#allocation12]   ;;  %s86_s5 = int_to_ptr.vmem [resolvable:$true] %s85_s5 }
  0x12   :  { %91 = dma.hbm_to_vmem [thread:$0]  %s84_s0, 512, %s86_s5, [#allocation10], %s1878_s3, %s1878_s3, %s1879_s21  }
  0x13   :  { %s103_s18 = sshll.u32 %s1883_s17, 4  ;;  %s104_s18 = int_to_ptr.vmem [resolvable:$true] %s103_s18 }
  0x14   :  { %106 = dma.hbm_to_vmem [thread:$0]  %s102_s15, 16, %s104_s18, [#allocation13]  }
  0x15   :  { %1864 = dma.done.wait [#allocation4], 256  }
  0x16   :  { %1865 = vsyncadd [#allocation4], 4294967040 }
  0x17   :  { %1866 = dma.done.wait [#allocation7], 144  }
  0x18   :  { %1867 = vsyncadd [#allocation7], 4294967152 }
  0x19   :  { %1868 = dma.done.wait [#allocation10], 1024  }
  0x1a   :  { %1869 = vsyncadd [#allocation10], 4294966272 }
  0x1b   :  { %1870 = dma.done.wait [#allocation13], 16  }
  0x1c   :  { %1871 = vsyncadd [#allocation13], 4294967280  ;;  %vm142_vm0 = vcmask 64512   ;;  %v137_v0 = vld [vmem:[%s2252_s4 + $0x18] sm:$0xff]  ;;  %v136_v1 = vld [vmem:[%s2252_s4 + $0x10] sm:$0xff]  ;;  %vm174_vm1 = vcmask 261120  }
  0x1d   :  { %v133_v2 = vld [vmem:[#allocation6] sm:$0xff]  ;;  %190 = vmatpush.msra.mxu1 %v137_v0  ;;  %v131_v3 = vld [vmem:[#allocation3] sm:$0xff]  ;;  %v135_v4 = vld [vmem:[%s2252_s4 + $0x8] sm:$0xff]  ;;  %260 = vmatpush.msra.mxu2 %v137_v0  ;;  %s1885_s27 = smov 32   ;;  %vm244_vm6 = vcmask 254976   ;;  %s1425_s3 = sshll.u32 %s2260_s12, 4  ;;  %s1426_s3 = int_to_ptr.hbm [resolvable:$true] %s1425_s3 }
  0x1e   :  { %164 = vmatpush.msra.mxu0 %v133_v2  ;;  %335 = vmatpush.msra.mxu3 %v137_v0  ;;  %v134_v5 = vld [vmem:[%s2252_s4] sm:$0xff]  ;;  %v1996_v7 = vld [vmem:[#allocation8] ss:$0 sm:$0xff]  ;;  %s1884_s4 = smov 64   ;;  %s1887_s21 = smov [#allocation15]  }
  0x1f   :  { %1463 = vmatmul.msk.f32.vlgmr.msra.gmra.mxu0 %vm142_vm0, %v131_v3  ;;  %191 = vmatpush.msra.mxu1 %v136_v1  ;;  %v172_v6 = vld [vmem:[%s2249_s1] sm:$0x3]  ;;  %s1423_s22 = sshll.u32 %s1887_s21, 4  ;;  %s1888_s23 = smov 2   ;;  %s1424_s22 = int_to_ptr.vmem [resolvable:$true] %s1423_s22 }
  0x20   :  { %261 = vmatpush.msra.mxu2 %v136_v1  ;;  %627 = vmatpush.msrb.mxu0 %v137_v0  ;;  %v173_v13 = vld [vmem:[%s2250_s2] sm:$0x3]  ;;  %s1438_s26 = sshll.u32 %s2261_s13, 4  ;;  %s1890_s12 = smov [#allocation14]   ;;  %s1439_s26 = int_to_ptr.hbm [resolvable:$true] %s1438_s26 }
  0x21   :  { %192 = vmatpush.msra.mxu1 %v135_v4  ;;  %336 = vmatpush.msra.mxu3 %v136_v1  ;;  %s1413_s6 = sshll.u32 %s1890_s12, 4  ;;  %s1414_s6 = int_to_ptr.vmem [resolvable:$true] %s1413_s6 }
  0x22   :  { %262 = vmatpush.msra.mxu2 %v135_v4  ;;  %628 = vmatpush.msrb.mxu0 %v136_v1 }
  0x23   :  { %193 = vmatpush.msra.mxu1 %v134_v5  ;;  %337 = vmatpush.msra.mxu3 %v135_v4 }
  0x24   :  { %1465 = vmatmul.msk.f32.vlgmr.msra.gmra.mxu1 %vm174_vm1, %v172_v6  ;;  %263 = vmatpush.msra.mxu2 %v134_v5 }
  0x25   :  { %338 = vmatpush.msra.mxu3 %v134_v5  ;;  %410 = vmatpush.msrb.mxu1 %v137_v0 }
  0x26   :  { %485 = vmatpush.msrb.mxu2 %v137_v0  ;;  %629 = vmatpush.msrb.mxu0 %v135_v4 }
  0x27   :  { %553 = vmatpush.msrb.mxu3 %v137_v0  ;;  %411 = vmatpush.msrb.mxu1 %v136_v1 }
  0x28   :  { %486 = vmatpush.msrb.mxu2 %v136_v1  ;;  %630 = vmatpush.msrb.mxu0 %v134_v5 }
  0x29   :  { %554 = vmatpush.msrb.mxu3 %v136_v1  ;;  %412 = vmatpush.msrb.mxu1 %v135_v4 }
  0x2a   :  { %487 = vmatpush.msrb.mxu2 %v135_v4 }
  0x2b   :  { %555 = vmatpush.msrb.mxu3 %v135_v4  ;;  %413 = vmatpush.msrb.mxu1 %v134_v5 }
  0x2c   :  { %488 = vmatpush.msrb.mxu2 %v134_v5 }
  0x2d   :  { %556 = vmatpush.msrb.mxu3 %v134_v5  ;;  %701 = vmatpush.msra.mxu1 %v137_v0 }
  0x2f   :  { %702 = vmatpush.msra.mxu1 %v136_v1 }
  0x31   :  { %703 = vmatpush.msra.mxu1 %v135_v4 }
  0x33   :  { %704 = vmatpush.msra.mxu1 %v134_v5 }
  0x9c   :  { %v166_v8 = vpop.f32.mrf.mxu0 }
  0x9d   :  { %v1999_v9 = vadd.f32 %v1996_v7, %v166_v8 }
  0xa1   :  { %v195_v10 = vpop.f32.mrf.mxu1 }
  0xa2   :  { %v198_v11 = vadd.f32 %v195_v10, %v1999_v9 }
  0xa4   :  { %1520 = vtanh.f32 %v198_v11  ;;  %v1466_v14 = vmul.f32 -1.442695, %v198_v11 }
  0xa6   :  { %1522 = vpow2.f32 %v1466_v14 }
  0xaa   :  { %v1521_v12 = vpop.eup %1520 }
  0xab   :  { %225 = vrot.lane.b32.xlu0 %v1521_v12, %s1884_s4 }
  0xac   :  { %v1523_v15 = vpop.eup %1522 }
  0xad   :  { %v202_v16 = vadd.f32 1.0, %v1523_v15 }
  0xaf   :  { %1524 = vrcp.f32 %v202_v16  ;;  %v214_v22 = vand.u32 2147483648, %v202_v16  ;;  %vm208_vm3 = vweird.f32 %v202_v16  ;;  %v212_v23 = vand.u32 2147483647, %v202_v16 }
  0xb1   :  { %v215_v25 = vor.u32 1.1754944e-38, %v214_v22  ;;  %vm213_vm5 = vcmp.eq.f32.partialorder %v212_v23, 8.507059e+37 }
  0xb3   :  { %220 = vrot.lane.b32.xlu0 %v173_v13, %s1885_s27 }
  0xb5   :  { %v1525_v17 = vpop.eup %1524 }
  0xb6   :  { %v204_v18 = vmul.f32 %v1525_v17, %v202_v16  ;;  %vm209_vm2 = vweird.f32 %v1525_v17 }
  0xb7   :  { %vm210_vm4 = vmor %vm208_vm3, %vm209_vm2 }
  0xb8   :  { %v205_v19 = vsub.f32 1.0, %v204_v18 }
  0xba   :  { %v206_v20 = vmul.f32 %v1525_v17, %v205_v19 }
  0xbc   :  { %v207_v21 = vadd.f32 %v1525_v17, %v206_v20 }
  0xbe   :  { %v211_v24 = vsel %vm210_vm4, %v1525_v17, %v207_v21 }
  0xbf   :  { %v216_v27 = vsel %vm213_vm5, %v215_v25, %v211_v24 }
 0x11d   :  { %v226_v26 = vpop.permute.xlu0 %225 }
 0x11e   :  { %v228_v28 = vmul.f32 %v226_v26, %v216_v27 }
 0x120   :  { %230 = vrot.lane.b32.xlu1 %v228_v28, %s1885_s27 }
 0x125   :  { %v221_v29 = vpop.permute.xlu0 %220 }
 0x126   :  { %v223_v30 = vmul.f32 %v221_v29, %v216_v27 }
 0x192   :  { %v231_v31 = vpop.permute.xlu1 %230 }
 0x193   :  { %v233_v32 = vadd.f32 %v231_v31, %v223_v30 }
 0x195   :  { %1526 = vtanh.f32 %v233_v32  ;;  %v293_v56 = vrot.slane %v233_v32, 6 }
 0x19b   :  { %v1527_v33 = vpop.eup %1526 }
 0x19c   :  { %236 = vrot.lane.b32.xlu1 %v1527_v33, %s1884_s4 }
 0x20e   :  { %v237_v34 = vpop.permute.xlu1 %236 }
 0x20f   :  { %v239_v35 = vmul.f32 %v237_v34, %v216_v27 }
 0x211   :  { %241 = vrot.lane.b32.xlu2 %v239_v35, %s1885_s27 }
 0x26b   :  { %v242_v36 = vpop.permute.xlu2 %241 }
 0x26c   :  { %245 = vst.msk [vmem:[#allocation2] sm:$0x3] %vm244_vm6, %v242_v36  ;;  %1467 = vmatmul.msk.f32.vlgmr.msra.gmra.mxu2 %vm174_vm1, %v242_v36 }
 0x2ef   :  { %v265_v37 = vpop.f32.mrf.mxu2 }
 0x2f0   :  { %v269_v38 = vrot.slane %v265_v37, 6 }
 0x2f2   :  { %v271_v39 = vadd.f32 %v269_v38, %v1999_v9 }
 0x2f4   :  { %1528 = vtanh.f32 %v271_v39  ;;  %v1468_v41 = vmul.f32 -1.442695, %v271_v39 }
 0x2f6   :  { %1530 = vpow2.f32 %v1468_v41 }
 0x2fa   :  { %v1529_v40 = vpop.eup %1528 }
 0x2fb   :  { %297 = vrot.lane.b32.xlu2 %v1529_v40, %s1884_s4 }
 0x2fc   :  { %v1531_v42 = vpop.eup %1530 }
 0x2fd   :  { %v275_v43 = vadd.f32 1.0, %v1531_v42 }
 0x2ff   :  { %1532 = vrcp.f32 %v275_v43  ;;  %v287_v49 = vand.u32 2147483648, %v275_v43  ;;  %vm281_vm8 = vweird.f32 %v275_v43  ;;  %v285_v50 = vand.u32 2147483647, %v275_v43 }
 0x301   :  { %v288_v52 = vor.u32 1.1754944e-38, %v287_v49  ;;  %vm286_vm10 = vcmp.eq.f32.partialorder %v285_v50, 8.507059e+37 }
 0x305   :  { %v1533_v44 = vpop.eup %1532 }
 0x306   :  { %v277_v45 = vmul.f32 %v1533_v44, %v275_v43  ;;  %vm282_vm7 = vweird.f32 %v1533_v44 }
 0x307   :  { %vm283_vm9 = vmor %vm281_vm8, %vm282_vm7 }
 0x308   :  { %v278_v46 = vsub.f32 1.0, %v277_v45 }
 0x30a   :  { %v279_v47 = vmul.f32 %v1533_v44, %v278_v46 }
 0x30c   :  { %v280_v48 = vadd.f32 %v1533_v44, %v279_v47 }
 0x30e   :  { %v284_v51 = vsel %vm283_vm9, %v1533_v44, %v280_v48  ;;  %vm316_vm9 = vcmask 257026  }
 0x30f   :  { %v289_v54 = vsel %vm286_vm10, %v288_v52, %v284_v51  ;;  %vm391_vm10 = vcmask 259076  }
 0x310   :  { %v295_v57 = vmul.f32 %v293_v56, %v289_v54 }
 0x355   :  { %v298_v53 = vpop.permute.xlu2 %297 }
 0x356   :  { %v300_v55 = vmul.f32 %v298_v53, %v289_v54 }
 0x358   :  { %302 = vrot.lane.b32.xlu0 %v300_v55, %s1885_s27 }
 0x3ca   :  { %v303_v58 = vpop.permute.xlu0 %302 }
 0x3cb   :  { %v305_v59 = vadd.f32 %v303_v58, %v295_v57  ;;  %v132_v57 = vld [vmem:[#allocation3 + $0x8] sm:$0xff] }
 0x3cc   :  { %1464 = vmatmul.msk.f32.gmra.mxu0 %vm142_vm0, %v132_v57 }
 0x3cd   :  { %1534 = vtanh.f32 %v305_v59  ;;  %v368_v22 = vrot.slane %v305_v59, 6 }
 0x3d3   :  { %v1535_v60 = vpop.eup %1534 }
 0x3d4   :  { %308 = vrot.lane.b32.xlu1 %v1535_v60, %s1884_s4 }
 0x446   :  { %v309_v61 = vpop.permute.xlu1 %308 }
 0x447   :  { %v2016_v62 = vmul.f32 %v309_v61, %v289_v54 }
 0x449   :  { %v318_v63 = vrot.slane %v2016_v62, 2  ;;  %v169_v59 = vpop.f32.mrf.mxu0 }
 0x44a   :  { %v2038_v60 = vadd.f32 %v1996_v7, %v169_v59 }
 0x44b   :  { %319 = vrot.lane.b32.xlu2 %v318_v63, %s1885_s27 }
 0x4a5   :  { %v320_v0 = vpop.permute.xlu2 %319 }
 0x4a6   :  { %1469 = vmatmul.msk.f32.vlgmr.msra.gmra.mxu3 %vm174_vm1, %v320_v0 }
 0x529   :  { %v340_v1 = vpop.f32.mrf.mxu3 }
 0x52a   :  { %v344_v2 = vrot.slane %v340_v1, 4 }
 0x52c   :  { %v346_v3 = vadd.f32 %v344_v2, %v1999_v9 }
 0x52e   :  { %1536 = vtanh.f32 %v346_v3  ;;  %v1470_v5 = vmul.f32 -1.442695, %v346_v3 }
 0x530   :  { %1538 = vpow2.f32 %v1470_v5 }
 0x534   :  { %v1537_v4 = vpop.eup %1536 }
 0x535   :  { %372 = vrot.lane.b32.xlu0 %v1537_v4, %s1884_s4 }
 0x536   :  { %v1539_v6 = vpop.eup %1538 }
 0x537   :  { %v350_v8 = vadd.f32 1.0, %v1539_v6 }
 0x539   :  { %1540 = vrcp.f32 %v350_v8  ;;  %v362_v15 = vand.u32 2147483648, %v350_v8  ;;  %vm356_vm12 = vweird.f32 %v350_v8  ;;  %v360_v16 = vand.u32 2147483647, %v350_v8 }
 0x53b   :  { %v363_v18 = vor.u32 1.1754944e-38, %v362_v15  ;;  %vm361_vm14 = vcmp.eq.f32.partialorder %v360_v16, 8.507059e+37 }
 0x53f   :  { %v1541_v10 = vpop.eup %1540 }
 0x540   :  { %v352_v11 = vmul.f32 %v1541_v10, %v350_v8  ;;  %vm357_vm11 = vweird.f32 %v1541_v10 }
 0x541   :  { %vm358_vm13 = vmor %vm356_vm12, %vm357_vm11  ;;  %vm466_vm11 = vcmask 261126  }
 0x542   :  { %v353_v12 = vsub.f32 1.0, %v352_v11 }
 0x544   :  { %v354_v13 = vmul.f32 %v1541_v10, %v353_v12 }
 0x546   :  { %v355_v14 = vadd.f32 %v1541_v10, %v354_v13 }
 0x548   :  { %v359_v17 = vsel %vm358_vm13, %v1541_v10, %v355_v14 }
 0x549   :  { %v364_v20 = vsel %vm361_vm14, %v363_v18, %v359_v17 }
 0x54a   :  { %v370_v23 = vmul.f32 %v368_v22, %v364_v20 }
 0x5a7   :  { %v373_v19 = vpop.permute.xlu0 %372 }
 0x5a8   :  { %v375_v21 = vmul.f32 %v373_v19, %v364_v20 }
 0x5aa   :  { %377 = vrot.lane.b32.xlu1 %v375_v21, %s1885_s27 }
 0x61c   :  { %v378_v24 = vpop.permute.xlu1 %377 }
 0x61d   :  { %v380_v25 = vadd.f32 %v378_v24, %v370_v23 }
 0x61f   :  { %1542 = vtanh.f32 %v380_v25  ;;  %v443_v49 = vrot.slane %v380_v25, 6  ;;  %v769_v25 = vld [vmem:[#allocation9 + $0x18] sm:$0xff] }
 0x620   :  { %796 = vmatpush.msra.mxu2 %v769_v25 }
 0x625   :  { %v1543_v26 = vpop.eup %1542 }
 0x626   :  { %383 = vrot.lane.b32.xlu2 %v1543_v26, %s1884_s4  ;;  %v768_v26 = vld [vmem:[#allocation9 + $0x10] sm:$0xff] }
 0x627   :  { %797 = vmatpush.msra.mxu2 %v768_v26 }
 0x680   :  { %v384_v27 = vpop.permute.xlu2 %383 }
 0x681   :  { %v2025_v28 = vmul.f32 %v384_v27, %v364_v20  ;;  %v2055_v27 = vld [vmem:[#allocation11 + $0x18] sm:$0xff] }
 0x682   :  { %826 = vmatpush.msra.mxu3 %v2055_v27  ;;  %893 = vmatpush.msra.mxu0 %v2055_v27 }
 0x683   :  { %v393_v29 = vrot.slane %v2025_v28, 4 }
 0x685   :  { %394 = vrot.lane.b32.xlu0 %v393_v29, %s1885_s27  ;;  %v2058_v29 = vld [vmem:[#allocation11 + $0x10] sm:$0xff] }
 0x686   :  { %827 = vmatpush.msra.mxu3 %v2058_v29  ;;  %894 = vmatpush.msra.mxu0 %v2058_v29 }
 0x6f7   :  { %v395_v30 = vpop.permute.xlu0 %394 }
 0x6f8   :  { %1471 = vmatmul.msk.f32.vlgmr.msrb.gmra.mxu1 %vm174_vm1, %v395_v30  ;;  %v2060_v30 = vld [vmem:[#allocation11 + $0x8] sm:$0xff] }
 0x6f9   :  { %963 = vmatpush.msrb.mxu1 %v2055_v27  ;;  %828 = vmatpush.msra.mxu3 %v2060_v30 }
 0x6fa   :  { %895 = vmatpush.msra.mxu0 %v2060_v30 }
 0x6fb   :  { %964 = vmatpush.msrb.mxu1 %v2058_v29 }
 0x6fd   :  { %965 = vmatpush.msrb.mxu1 %v2060_v30 }
 0x775   :  { %v415_v31 = vpop.f32.mrf.mxu1 }
 0x776   :  { %v419_v32 = vrot.slane %v415_v31, 2  ;;  %v766_v31 = vld [vmem:[#allocation9] sm:$0xff] }
 0x778   :  { %v421_v33 = vadd.f32 %v419_v32, %v1999_v9  ;;  %v2070_v32 = vld [vmem:[#allocation11] sm:$0xff] }
 0x779   :  { %829 = vmatpush.msra.mxu3 %v2070_v32  ;;  %896 = vmatpush.msra.mxu0 %v2070_v32 }
 0x77a   :  { %1544 = vtanh.f32 %v421_v33  ;;  %v1472_v35 = vmul.f32 -1.442695, %v421_v33  ;;  %966 = vmatpush.msrb.mxu1 %v2070_v32 }
 0x77c   :  { %1546 = vpow2.f32 %v1472_v35 }
 0x780   :  { %v1545_v34 = vpop.eup %1544 }
 0x781   :  { %447 = vrot.lane.b32.xlu1 %v1545_v34, %s1884_s4  ;;  %v1483_v34 = vld [vmem:[%s2249_s1 + $0x2] sm:$0x3]  ;;  %s1415_s1 = sshll.u32 %s2259_s11, 4  ;;  %s1416_s1 = int_to_ptr.hbm [resolvable:$true] %s1415_s1 }
 0x782   :  { %v1547_v36 = vpop.eup %1546 }
 0x783   :  { %v425_v37 = vadd.f32 1.0, %v1547_v36 }
 0x785   :  { %1548 = vrcp.f32 %v425_v37  ;;  %v437_v43 = vand.u32 2147483648, %v425_v37  ;;  %vm431_vm2 = vweird.f32 %v425_v37  ;;  %v435_v44 = vand.u32 2147483647, %v425_v37 }
 0x787   :  { %v438_v45 = vor.u32 1.1754944e-38, %v437_v43  ;;  %vm436_vm4 = vcmp.eq.f32.partialorder %v435_v44, 8.507059e+37 }
 0x78b   :  { %v1549_v38 = vpop.eup %1548 }
 0x78c   :  { %v427_v39 = vmul.f32 %v1549_v38, %v425_v37  ;;  %vm432_vm15 = vweird.f32 %v1549_v38 }
 0x78d   :  { %vm433_vm3 = vmor %vm431_vm2, %vm432_vm15 }
 0x78e   :  { %v428_v40 = vsub.f32 1.0, %v427_v39 }
 0x790   :  { %v429_v41 = vmul.f32 %v1549_v38, %v428_v40 }
 0x792   :  { %v430_v42 = vadd.f32 %v1549_v38, %v429_v41  ;;  %v2100_v41 = vld [vmem:[%s2256_s8] ss:$0 sm:$0xff] }
 0x794   :  { %v434_v9 = vsel %vm433_vm3, %v1549_v38, %v430_v42 }
 0x795   :  { %v439_v47 = vsel %vm436_vm4, %v438_v45, %v434_v9  ;;  %v1484_v9 = vld [vmem:[%s2250_s2 + $0x2] sm:$0x3]  ;;  %s1886_s2 = smov 96  }
 0x796   :  { %v445_v50 = vmul.f32 %v443_v49, %v439_v47 }
 0x7f3   :  { %v448_v46 = vpop.permute.xlu1 %447 }
 0x7f4   :  { %v450_v48 = vmul.f32 %v448_v46, %v439_v47 }
 0x7f6   :  { %452 = vrot.lane.b32.xlu2 %v450_v48, %s1885_s27 }
 0x850   :  { %v453_v51 = vpop.permute.xlu2 %452 }
 0x851   :  { %v455_v52 = vadd.f32 %v453_v51, %v445_v50 }
 0x853   :  { %1550 = vtanh.f32 %v455_v52  ;;  %v515_v17 = vrot.slane %v455_v52, 6 }
 0x859   :  { %v1551_v53 = vpop.eup %1550 }
 0x85a   :  { %458 = vrot.lane.b32.xlu0 %v1551_v53, %s1884_s4 }
 0x8cc   :  { %v459_v54 = vpop.permute.xlu0 %458 }
 0x8cd   :  { %v461_v55 = vmul.f32 %v459_v54, %v439_v47 }
 0x8cf   :  { %v468_v56 = vrot.slane %v461_v55, 6 }
 0x8d1   :  { %469 = vrot.lane.b32.xlu1 %v468_v56, %s1885_s27 }
 0x943   :  { %v470_v58 = vpop.permute.xlu1 %469 }
 0x944   :  { %1473 = vmatmul.msk.f32.vlgmr.msrb.gmra.mxu2 %vm174_vm1, %v470_v58 }
 0x9c7   :  { %v490_v61 = vpop.f32.mrf.mxu2 }
 0x9c8   :  { %v493_v63 = vadd.f32 %v490_v61, %v2038_v60 }
 0x9ca   :  { %1552 = vtanh.f32 %v493_v63  ;;  %v1474_v1 = vmul.f32 -1.442695, %v493_v63 }
 0x9cc   :  { %1554 = vpow2.f32 %v1474_v1 }
 0x9d0   :  { %v1553_v0 = vpop.eup %1552 }
 0x9d1   :  { %519 = vrot.lane.b32.xlu2 %v1553_v0, %s1884_s4 }
 0x9d2   :  { %v1555_v2 = vpop.eup %1554 }
 0x9d3   :  { %v497_v3 = vadd.f32 1.0, %v1555_v2 }
 0x9d5   :  { %1556 = vrcp.f32 %v497_v3  ;;  %v509_v7 = vand.u32 2147483648, %v497_v3  ;;  %vm503_vm5 = vweird.f32 %v497_v3  ;;  %v507_v11 = vand.u32 2147483647, %v497_v3 }
 0x9d7   :  { %v510_v13 = vor.u32 1.1754944e-38, %v509_v7  ;;  %vm508_vm8 = vcmp.eq.f32.partialorder %v507_v11, 8.507059e+37 }
 0x9db   :  { %v1557_v4 = vpop.eup %1556 }
 0x9dc   :  { %v499_v5 = vmul.f32 %v1557_v4, %v497_v3  ;;  %vm504_vm0 = vweird.f32 %v1557_v4 }
 0x9dd   :  { %vm505_vm7 = vmor %vm503_vm5, %vm504_vm0 }
 0x9de   :  { %v500_v6 = vsub.f32 1.0, %v499_v5 }
 0x9e0   :  { %v501_v8 = vmul.f32 %v1557_v4, %v500_v6 }
 0x9e2   :  { %v502_v10 = vadd.f32 %v1557_v4, %v501_v8 }
 0x9e4   :  { %v506_v12 = vsel %vm505_vm7, %v1557_v4, %v502_v10 }
 0x9e5   :  { %v511_v15 = vsel %vm508_vm8, %v510_v13, %v506_v12 }
 0x9e6   :  { %v517_v18 = vmul.f32 %v515_v17, %v511_v15 }
 0xa2b   :  { %v520_v14 = vpop.permute.xlu2 %519 }
 0xa2c   :  { %v522_v16 = vmul.f32 %v520_v14, %v511_v15 }
 0xa2e   :  { %524 = vrot.lane.b32.xlu0 %v522_v16, %s1885_s27 }
 0xa36   :  { %313 = vrot.lane.b32.xlu0 %v2016_v62, %s1885_s27 }
 0xaa0   :  { %v525_v19 = vpop.permute.xlu0 %524 }
 0xaa1   :  { %v2045_v20 = vadd.f32 %v525_v19, %v517_v18 }
 0xaa3   :  { %1558 = vtanh.f32 %v2045_v20  ;;  %v586_v16 = vrot.slane %v2045_v20, 6 }
 0xaa8   :  { %v314_v21 = vpop.permute.xlu0 %313 }
 0xaa9   :  { %v1559_v22 = vpop.eup %1558  ;;  %317 = vst.msk [vmem:[#allocation2] sm:$0xc] %vm316_vm9, %v314_v21 }
 0xaaa   :  { %530 = vrot.lane.b32.xlu1 %v1559_v22, %s1884_s4 }
 0xab2   :  { %388 = vrot.lane.b32.xlu1 %v2025_v28, %s1885_s27  ;;  %v767_v28 = vld [vmem:[#allocation9 + $0x8] sm:$0xff] }
 0xab3   :  { %798 = vmatpush.msra.mxu2 %v767_v28 }
 0xab5   :  { %799 = vmatpush.msra.mxu2 %v766_v31 }
 0xab7   :  { %1239 = vmatpush.msrb.mxu2 %v2055_v27 }
 0xab9   :  { %1240 = vmatpush.msrb.mxu2 %v2058_v29 }
 0xabb   :  { %1241 = vmatpush.msrb.mxu2 %v2060_v30 }
 0xabd   :  { %1242 = vmatpush.msrb.mxu2 %v2070_v32 }
 0xb1c   :  { %v531_v23 = vpop.permute.xlu1 %530 }
 0xb1d   :  { %v533_v24 = vmul.f32 %v531_v23, %v511_v15 }
 0xb1f   :  { %535 = vrot.lane.b32.xlu2 %v533_v24, %s1885_s27 }
 0xb24   :  { %v389_v62 = vpop.permute.xlu1 %388 }
 0xb25   :  { %392 = vst.msk [vmem:[#allocation2] sm:$0x30] %vm391_vm10, %v389_v62 }
 0xb27   :  { %463 = vrot.lane.b32.xlu2 %v461_v55, %s1885_s27 }
 0xb79   :  { %v536_v33 = vpop.permute.xlu2 %535 }
 0xb7a   :  { %538 = vst.msk [vmem:[#allocation2 + $0x8] sm:$0x3] %vm244_vm6, %v536_v33  ;;  %1475 = vmatmul.msk.f32.vlgmr.msrb.gmra.mxu3 %vm174_vm1, %v536_v33 }
 0xb7b   :  { %1033 = vmatpush.msrb.mxu3 %v2055_v27 }
 0xb7d   :  { %1034 = vmatpush.msrb.mxu3 %v2058_v29 }
 0xb7f   :  { %1035 = vmatpush.msrb.mxu3 %v2060_v30 }
 0xb81   :  { %v464_v35 = vpop.permute.xlu2 %463  ;;  %1036 = vmatpush.msrb.mxu3 %v2070_v32 }
 0xb82   :  { %467 = vst.msk [vmem:[#allocation2] sm:$0xc0] %vm466_vm11, %v464_v35  ;;  %1485 = vmatmul.msk.f32.vlgmr.msra.gmra.mxu3 %vm174_vm1, %v1483_v34 }
 0xb83   :  { %1309 = vmatpush.msra.mxu3 %v2055_v27 }
 0xb85   :  { %1310 = vmatpush.msra.mxu3 %v2058_v29 }
 0xb87   :  { %1311 = vmatpush.msra.mxu3 %v2060_v30 }
 0xb89   :  { %v764_v36 = vld [vmem:[#allocation2] sm:$0xff]  ;;  %1312 = vmatpush.msra.mxu3 %v2070_v32 }
 0xb8a   :  { %1481 = vmatmul.msk.f32.vlgmr.msra.gmra.mxu2 %vm174_vm1, %v764_v36 }
 0xbfd   :  { %v558_v37 = vpop.f32.mrf.mxu3 }
 0xbfe   :  { %v562_v38 = vrot.slane %v558_v37, 6 }
 0xc00   :  { %v564_v39 = vadd.f32 %v562_v38, %v2038_v60 }
 0xc02   :  { %1560 = vtanh.f32 %v564_v39  ;;  %v1476_v47 = vmul.f32 -1.442695, %v564_v39 }
 0xc05   :  { %v831_v43 = vpop.f32.mrf.mxu3 }
 0xc08   :  { %v1561_v40 = vpop.eup %1560 }
 0xc09   :  { %590 = vrot.lane.b32.xlu0 %v1561_v40, %s1884_s4 }
 0xc0d   :  { %v801_v42 = vpop.f32.mrf.mxu2 }
 0xc0e   :  { %v2103_v44 = vadd.f32 %v2100_v41, %v801_v42 }
 0xc10   :  { %v834_v45 = vadd.f32 %v831_v43, %v2103_v44 }
 0xc11   :  { %856 = vrot.lane.b32.xlu0 %v1484_v9, %s1885_s27 }
 0xc12   :  { %1562 = vtanh.f32 %v834_v45  ;;  %v1486_v50 = vmul.f32 -1.442695, %v834_v45 }
 0xc13   :  { %1564 = vpow2.f32 %v1476_v47 }
 0xc18   :  { %v1563_v46 = vpop.eup %1562 }
 0xc19   :  { %861 = vrot.lane.b32.xlu1 %v1563_v46, %s1884_s4  ;;  %v1565_v48 = vpop.eup %1564 }
 0xc1a   :  { %v568_v49 = vadd.f32 1.0, %v1565_v48 }
 0xc1c   :  { %1566 = vrcp.f32 %v568_v49  ;;  %v580_v59 = vand.u32 2147483648, %v568_v49  ;;  %vm574_vm12 = vweird.f32 %v568_v49  ;;  %v578_v61 = vand.u32 2147483647, %v568_v49 }
 0xc1d   :  { %1568 = vpow2.f32 %v1486_v50 }
 0xc1e   :  { %v581_v1 = vor.u32 1.1754944e-38, %v580_v59  ;;  %vm579_vm14 = vcmp.eq.f32.partialorder %v578_v61, 8.507059e+37 }
 0xc22   :  { %v1567_v51 = vpop.eup %1566 }
 0xc23   :  { %v1569_v52 = vpop.eup %1568  ;;  %v570_v53 = vmul.f32 %v1567_v51, %v568_v49  ;;  %vm575_vm6 = vweird.f32 %v1567_v51 }
 0xc24   :  { %v838_v54 = vadd.f32 1.0, %v1569_v52  ;;  %vm576_vm13 = vmor %vm574_vm12, %vm575_vm6 }
 0xc25   :  { %v571_v55 = vsub.f32 1.0, %v570_v53 }
 0xc26   :  { %1570 = vrcp.f32 %v838_v54  ;;  %v850_v10 = vand.u32 2147483648, %v838_v54  ;;  %vm844_vm2 = vweird.f32 %v838_v54  ;;  %v848_v7 = vand.u32 2147483647, %v838_v54 }
 0xc27   :  { %v572_v56 = vmul.f32 %v1567_v51, %v571_v55 }
 0xc28   :  { %v851_v12 = vor.u32 1.1754944e-38, %v850_v10  ;;  %vm849_vm4 = vcmp.eq.f32.partialorder %v848_v7, 8.507059e+37 }
 0xc29   :  { %v573_v57 = vadd.f32 %v1567_v51, %v572_v56 }
 0xc2b   :  { %v577_v63 = vsel %vm576_vm13, %v1567_v51, %v573_v57 }
 0xc2c   :  { %v1571_v58 = vpop.eup %1570  ;;  %v582_v3 = vsel %vm579_vm14, %v581_v1, %v577_v63 }
 0xc2d   :  { %v840_v0 = vmul.f32 %v1571_v58, %v838_v54  ;;  %vm845_vm15 = vweird.f32 %v1571_v58  ;;  %v588_v17 = vmul.f32 %v586_v16, %v582_v3 }
 0xc2e   :  { %vm846_vm3 = vmor %vm844_vm2, %vm845_vm15 }
 0xc2f   :  { %v841_v5 = vsub.f32 1.0, %v840_v0 }
 0xc31   :  { %v842_v6 = vmul.f32 %v1571_v58, %v841_v5 }
 0xc33   :  { %v843_v8 = vadd.f32 %v1571_v58, %v842_v6 }
 0xc35   :  { %v847_v11 = vsel %vm846_vm3, %v1571_v58, %v843_v8 }
 0xc36   :  { %v852_v13 = vsel %vm849_vm4, %v851_v12, %v847_v11 }
 0xc7b   :  { %v591_v2 = vpop.permute.xlu0 %590 }
 0xc7c   :  { %v593_v4 = vmul.f32 %v591_v2, %v582_v3 }
 0xc7e   :  { %595 = vrot.lane.b32.xlu2 %v593_v4, %s1885_s27 }
 0xc83   :  { %v857_v22 = vpop.permute.xlu0 %856 }
 0xc84   :  { %v859_v23 = vmul.f32 %v857_v22, %v852_v13 }
 0xc8b   :  { %v862_v14 = vpop.permute.xlu1 %861 }
 0xc8c   :  { %v864_v15 = vmul.f32 %v862_v14, %v852_v13 }
 0xc8e   :  { %866 = vrot.lane.b32.xlu1 %v864_v15, %s1885_s27 }
 0xcd8   :  { %v596_v18 = vpop.permute.xlu2 %595 }
 0xcd9   :  { %v2114_v19 = vadd.f32 %v596_v18, %v588_v17 }
 0xcdb   :  { %1572 = vtanh.f32 %v2114_v19  ;;  %v660_v14 = vrot.slane %v2114_v19, 6 }
 0xce1   :  { %v1573_v21 = vpop.eup %1572 }
 0xce2   :  { %601 = vrot.lane.b32.xlu2 %v1573_v21, %s1884_s4 }
 0xd00   :  { %v867_v24 = vpop.permute.xlu1 %866 }
 0xd01   :  { %v2118_v62 = vadd.f32 %v867_v24, %v859_v23 }
 0xd03   :  { %1574 = vtanh.f32 %v2118_v62  ;;  %v926_v21 = vrot.slane %v2118_v62, 6 }
 0xd09   :  { %v1575_v25 = vpop.eup %1574 }
 0xd0a   :  { %872 = vrot.lane.b32.xlu0 %v1575_v25, %s1884_s4 }
 0xd3c   :  { %v602_v20 = vpop.permute.xlu2 %601 }
 0xd3d   :  { %v2122_v26 = vmul.f32 %v602_v20, %v582_v3 }
 0xd3f   :  { %v610_v28 = vrot.slane %v2122_v26, 2 }
 0xd41   :  { %611 = vrot.lane.b32.xlu1 %v610_v28, %s1885_s27 }
 0xd7c   :  { %v873_v31 = vpop.permute.xlu0 %872 }
 0xd7d   :  { %v875_v33 = vmul.f32 %v873_v31, %v852_v13 }
 0xd7f   :  { %877 = vrot.lane.b32.xlu2 %v875_v33, %s1885_s27 }
 0xdb3   :  { %v612_v34 = vpop.permute.xlu1 %611 }
 0xdb4   :  { %1477 = vmatmul.msk.f32.vlgmr.msrb.gmra.mxu0 %vm174_vm1, %v612_v34 }
 0xdb5   :  { %1103 = vmatpush.msrb.mxu0 %v2055_v27 }
 0xdb7   :  { %1104 = vmatpush.msrb.mxu0 %v2058_v29 }
 0xdb9   :  { %1105 = vmatpush.msrb.mxu0 %v2060_v30 }
 0xdbb   :  { %1106 = vmatpush.msrb.mxu0 %v2070_v32 }
 0xdd9   :  { %v878_v35 = vpop.permute.xlu2 %877 }
 0xdda   :  { %1487 = vmatmul.msk.f32.vlgmr.msra.gmra.mxu0 %vm174_vm1, %v878_v35 }
 0xe31   :  { %v632_v36 = vpop.f32.mrf.mxu0 }
 0xe32   :  { %v636_v37 = vrot.slane %v632_v36, 4 }
 0xe34   :  { %v638_v38 = vadd.f32 %v636_v37, %v2038_v60 }
 0xe36   :  { %1576 = vtanh.f32 %v638_v38  ;;  %v1478_v45 = vmul.f32 -1.442695, %v638_v38 }
 0xe3c   :  { %v1577_v39 = vpop.eup %1576 }
 0xe3d   :  { %664 = vrot.lane.b32.xlu0 %v1577_v39, %s1884_s4 }
 0xe57   :  { %v898_v40 = vpop.f32.mrf.mxu0 }
 0xe58   :  { %v902_v42 = vrot.slane %v898_v40, 6 }
 0xe5a   :  { %v904_v43 = vadd.f32 %v902_v42, %v2103_v44 }
 0xe5c   :  { %1578 = vtanh.f32 %v904_v43  ;;  %v1488_v52 = vmul.f32 -1.442695, %v904_v43 }
 0xe5d   :  { %1580 = vpow2.f32 %v1478_v45 }
 0xe62   :  { %v1579_v9 = vpop.eup %1578 }
 0xe63   :  { %930 = vrot.lane.b32.xlu1 %v1579_v9, %s1884_s4  ;;  %v1581_v46 = vpop.eup %1580 }
 0xe64   :  { %v642_v47 = vadd.f32 1.0, %v1581_v46 }
 0xe66   :  { %1582 = vrcp.f32 %v642_v47  ;;  %v654_v54 = vand.u32 2147483648, %v642_v47  ;;  %vm648_vm5 = vweird.f32 %v642_v47  ;;  %v652_v55 = vand.u32 2147483647, %v642_v47 }
 0xe67   :  { %1584 = vpow2.f32 %v1488_v52 }
 0xe68   :  { %v655_v57 = vor.u32 1.1754944e-38, %v654_v54  ;;  %vm653_vm8 = vcmp.eq.f32.partialorder %v652_v55, 8.507059e+37 }
 0xe6c   :  { %v1583_v48 = vpop.eup %1582 }
 0xe6d   :  { %v644_v49 = vmul.f32 %v1583_v48, %v642_v47  ;;  %vm649_vm0 = vweird.f32 %v1583_v48  ;;  %v1585_v63 = vpop.eup %1584 }
 0xe6e   :  { %vm650_vm7 = vmor %vm648_vm5, %vm649_vm0  ;;  %v908_v0 = vadd.f32 1.0, %v1585_v63 }
 0xe6f   :  { %v645_v50 = vsub.f32 1.0, %v644_v49 }
 0xe70   :  { %1586 = vrcp.f32 %v908_v0  ;;  %v920_v6 = vand.u32 2147483648, %v908_v0  ;;  %vm914_vm12 = vweird.f32 %v908_v0  ;;  %v918_v8 = vand.u32 2147483647, %v908_v0 }
 0xe71   :  { %v646_v51 = vmul.f32 %v1583_v48, %v645_v50 }
 0xe72   :  { %v921_v7 = vor.u32 1.1754944e-38, %v920_v6  ;;  %vm919_vm14 = vcmp.eq.f32.partialorder %v918_v8, 8.507059e+37 }
 0xe73   :  { %v647_v53 = vadd.f32 %v1583_v48, %v646_v51 }
 0xe75   :  { %v651_v56 = vsel %vm650_vm7, %v1583_v48, %v647_v53 }
 0xe76   :  { %v656_v58 = vsel %vm653_vm8, %v655_v57, %v651_v56  ;;  %v1587_v1 = vpop.eup %1586 }
 0xe77   :  { %v910_v2 = vmul.f32 %v1587_v1, %v908_v0  ;;  %vm915_vm6 = vweird.f32 %v1587_v1  ;;  %v662_v15 = vmul.f32 %v660_v14, %v656_v58 }
 0xe78   :  { %vm916_vm13 = vmor %vm914_vm12, %vm915_vm6 }
 0xe79   :  { %v911_v3 = vsub.f32 1.0, %v910_v2 }
 0xe7b   :  { %v912_v4 = vmul.f32 %v1587_v1, %v911_v3 }
 0xe7d   :  { %v913_v5 = vadd.f32 %v1587_v1, %v912_v4 }
 0xe7f   :  { %v917_v10 = vsel %vm916_vm13, %v1587_v1, %v913_v5 }
 0xe80   :  { %v922_v12 = vsel %vm919_vm14, %v921_v7, %v917_v10 }
 0xe81   :  { %v928_v22 = vmul.f32 %v926_v21, %v922_v12 }
 0xeaf   :  { %v665_v59 = vpop.permute.xlu0 %664 }
 0xeb0   :  { %v667_v61 = vmul.f32 %v665_v59, %v656_v58 }
 0xeb2   :  { %669 = vrot.lane.b32.xlu2 %v667_v61, %s1885_s27 }
 0xed5   :  { %v931_v11 = vpop.permute.xlu1 %930 }
 0xed6   :  { %v933_v13 = vmul.f32 %v931_v11, %v922_v12 }
 0xed8   :  { %935 = vrot.lane.b32.xlu0 %v933_v13, %s1885_s27 }
 0xf0c   :  { %v670_v16 = vpop.permute.xlu2 %669 }
 0xf0d   :  { %v2140_v17 = vadd.f32 %v670_v16, %v662_v15 }
 0xf0f   :  { %1588 = vtanh.f32 %v2140_v17 }
 0xf15   :  { %v1589_v18 = vpop.eup %1588 }
 0xf16   :  { %675 = vrot.lane.b32.xlu1 %v1589_v18, %s1884_s4 }
 0xf4a   :  { %v936_v23 = vpop.permute.xlu0 %935 }
 0xf4b   :  { %v938_v24 = vadd.f32 %v936_v23, %v928_v22 }
 0xf4d   :  { %1590 = vtanh.f32 %v938_v24  ;;  %v996_v56 = vrot.slane %v938_v24, 6  ;;  %v734_v24 = vrot.slane %v2140_v17, 6 }
 0xf53   :  { %v1591_v25 = vpop.eup %1590 }
 0xf54   :  { %941 = vrot.lane.b32.xlu2 %v1591_v25, %s1884_s4 }
 0xf88   :  { %v676_v20 = vpop.permute.xlu1 %675 }
 0xf89   :  { %v2146_v19 = vmul.f32 %v676_v20, %v656_v58 }
 0xf8b   :  { %v684_v28 = vrot.slane %v2146_v19, 4 }
 0xf8d   :  { %685 = vrot.lane.b32.xlu0 %v684_v28, %s1885_s27 }
 0xfae   :  { %v942_v31 = vpop.permute.xlu2 %941 }
 0xfaf   :  { %v944_v33 = vmul.f32 %v942_v31, %v922_v12 }
 0xfb1   :  { %v946_v34 = vrot.slane %v944_v33, 2 }
 0xfb3   :  { %947 = vrot.lane.b32.xlu1 %v946_v34, %s1885_s27 }
 0xfff   :  { %v686_v62 = vpop.permute.xlu0 %685 }
0x1000   :  { %1479 = vmatmul.msk.f32.vlgmr.msra.gmra.mxu1 %vm174_vm1, %v686_v62 }
0x1001   :  { %1169 = vmatpush.msra.mxu1 %v2055_v27 }
0x1003   :  { %1170 = vmatpush.msra.mxu1 %v2058_v29 }
0x1005   :  { %1171 = vmatpush.msra.mxu1 %v2060_v30 }
0x1007   :  { %1172 = vmatpush.msra.mxu1 %v2070_v32 }
0x1025   :  { %v948_v35 = vpop.permute.xlu1 %947 }
0x1026   :  { %1489 = vmatmul.msk.f32.vlgmr.msrb.gmra.mxu1 %vm174_vm1, %v948_v35 }
0x107d   :  { %v706_v36 = vpop.f32.mrf.mxu1 }
0x107e   :  { %v710_v48 = vrot.slane %v706_v36, 2 }
0x1080   :  { %v712_v51 = vadd.f32 %v710_v48, %v2038_v60 }
0x1082   :  { %v1480_v60 = vmul.f32 -1.442695, %v712_v51 }
0x10a3   :  { %v968_v37 = vpop.f32.mrf.mxu1 }
0x10a4   :  { %v972_v38 = vrot.slane %v968_v37, 4 }
0x10a6   :  { %v974_v39 = vadd.f32 %v972_v38, %v2103_v44 }
0x10a8   :  { %1592 = vtanh.f32 %v974_v39  ;;  %v1490_v42 = vmul.f32 -1.442695, %v974_v39 }
0x10aa   :  { %1594 = vpow2.f32 %v1490_v42 }
0x10ae   :  { %v1593_v40 = vpop.eup %1592 }
0x10af   :  { %1000 = vrot.lane.b32.xlu2 %v1593_v40, %s1884_s4 }
0x10b0   :  { %v1595_v27 = vpop.eup %1594 }
0x10b1   :  { %v978_v29 = vadd.f32 1.0, %v1595_v27 }
0x10b3   :  { %1596 = vrcp.f32 %v978_v29  ;;  %v990_v46 = vand.u32 2147483648, %v978_v29  ;;  %vm984_vm2 = vweird.f32 %v978_v29  ;;  %v988_v47 = vand.u32 2147483647, %v978_v29 }
0x10b4   :  { %1598 = vtanh.f32 %v712_v51 }
0x10b5   :  { %v991_v50 = vor.u32 1.1754944e-38, %v990_v46  ;;  %vm989_vm4 = vcmp.eq.f32.partialorder %v988_v47, 8.507059e+37 }
0x10b9   :  { %v1597_v30 = vpop.eup %1596 }
0x10ba   :  { %v980_v43 = vmul.f32 %v1597_v30, %v978_v29  ;;  %vm985_vm15 = vweird.f32 %v1597_v30  ;;  %v1599_v55 = vpop.eup %1598 }
0x10bb   :  { %vm986_vm3 = vmor %vm984_vm2, %vm985_vm15 }
0x10bc   :  { %v981_v32 = vsub.f32 1.0, %v980_v43 }
0x10be   :  { %v982_v9 = vmul.f32 %v1597_v30, %v981_v32 }
0x10c0   :  { %v983_v45 = vadd.f32 %v1597_v30, %v982_v9 }
0x10c2   :  { %v987_v49 = vsel %vm986_vm3, %v1597_v30, %v983_v45 }
0x10c3   :  { %v992_v53 = vsel %vm989_vm4, %v991_v50, %v987_v49 }
0x10c4   :  { %v998_v57 = vmul.f32 %v996_v56, %v992_v53 }
0x1109   :  { %v1001_v52 = vpop.permute.xlu2 %1000 }
0x110a   :  { %v1003_v54 = vmul.f32 %v1001_v52, %v992_v53 }
0x110c   :  { %1005 = vrot.lane.b32.xlu0 %v1003_v54, %s1885_s27 }
0x1114   :  { %738 = vrot.lane.b32.xlu0 %v1599_v55, %s1884_s4 }
0x117e   :  { %v1006_v58 = vpop.permute.xlu0 %1005 }
0x117f   :  { %v2162_v59 = vadd.f32 %v1006_v58, %v998_v57 }
0x1181   :  { %1600 = vtanh.f32 %v2162_v59  ;;  %v1066_v9 = vrot.slane %v2162_v59, 6 }
0x1182   :  { %1602 = vpow2.f32 %v1480_v60 }
0x1186   :  { %v739_v13 = vpop.permute.xlu0 %738 }
0x1187   :  { %v1601_v61 = vpop.eup %1600 }
0x1188   :  { %1011 = vrot.lane.b32.xlu1 %v1601_v61, %s1884_s4  ;;  %v1603_v63 = vpop.eup %1602 }
0x1189   :  { %v716_v0 = vadd.f32 1.0, %v1603_v63 }
0x118b   :  { %1604 = vrcp.f32 %v716_v0  ;;  %v728_v7 = vand.u32 2147483648, %v716_v0  ;;  %vm722_vm5 = vweird.f32 %v716_v0  ;;  %v726_v11 = vand.u32 2147483647, %v716_v0 }
0x118d   :  { %v729_v14 = vor.u32 1.1754944e-38, %v728_v7  ;;  %vm727_vm8 = vcmp.eq.f32.partialorder %v726_v11, 8.507059e+37 }
0x1191   :  { %v1605_v1 = vpop.eup %1604 }
0x1192   :  { %v718_v2 = vmul.f32 %v1605_v1, %v716_v0  ;;  %vm723_vm0 = vweird.f32 %v1605_v1 }
0x1193   :  { %vm724_vm7 = vmor %vm722_vm5, %vm723_vm0 }
0x1194   :  { %v719_v3 = vsub.f32 1.0, %v718_v2 }
0x1196   :  { %v720_v4 = vmul.f32 %v1605_v1, %v719_v3 }
0x1198   :  { %v721_v8 = vadd.f32 %v1605_v1, %v720_v4 }
0x119a   :  { %v725_v12 = vsel %vm724_vm7, %v1605_v1, %v721_v8 }
0x119b   :  { %v730_v15 = vsel %vm727_vm8, %v729_v14, %v725_v12 }
0x119c   :  { %v741_v16 = vmul.f32 %v739_v13, %v730_v15  ;;  %v736_v20 = vmul.f32 %v734_v24, %v730_v15 }
0x11fa   :  { %v1012_v5 = vpop.permute.xlu1 %1011 }
0x11fb   :  { %v1014_v6 = vmul.f32 %v1012_v5, %v992_v53 }
0x11fd   :  { %v1016_v10 = vrot.slane %v1014_v6, 4 }
0x11ff   :  { %1017 = vrot.lane.b32.xlu2 %v1016_v10, %s1885_s27 }
0x1207   :  { %743 = vrot.lane.b32.xlu2 %v741_v16, %s1885_s27 }
0x1259   :  { %v1018_v18 = vpop.permute.xlu2 %1017 }
0x125a   :  { %1491 = vmatmul.msk.f32.vlgmr.msrb.gmra.mxu3 %vm174_vm1, %v1018_v18 }
0x1261   :  { %v744_v25 = vpop.permute.xlu2 %743 }
0x1262   :  { %v2171_v28 = vadd.f32 %v744_v25, %v736_v20 }
0x12dd   :  { %v1038_v21 = vpop.f32.mrf.mxu3 }
0x12de   :  { %v1042_v22 = vrot.slane %v1038_v21, 2 }
0x12e0   :  { %v1044_v23 = vadd.f32 %v1042_v22, %v2103_v44 }
0x12e2   :  { %1606 = vtanh.f32 %v1044_v23  ;;  %v1492_v34 = vmul.f32 -1.442695, %v1044_v23 }
0x12e3   :  { %1608 = vtanh.f32 %v2171_v28 }
0x12e4   :  { %1610 = vpow2.f32 %v1492_v34 }
0x12e8   :  { %v1607_v31 = vpop.eup %1606 }
0x12e9   :  { %1070 = vrot.lane.b32.xlu1 %v1607_v31, %s1884_s4  ;;  %v1609_v33 = vpop.eup %1608 }
0x12ea   :  { %v1611_v44 = vpop.eup %1610 }
0x12eb   :  { %v1048_v17 = vadd.f32 1.0, %v1611_v44 }
0x12ed   :  { %1612 = vrcp.f32 %v1048_v17  ;;  %v1060_v39 = vand.u32 2147483648, %v1048_v17  ;;  %vm1054_vm12 = vweird.f32 %v1048_v17  ;;  %v1058_v40 = vand.u32 2147483647, %v1048_v17 }
0x12ef   :  { %v1061_v27 = vor.u32 1.1754944e-38, %v1060_v39  ;;  %vm1059_vm14 = vcmp.eq.f32.partialorder %v1058_v40, 8.507059e+37 }
0x12f1   :  { %749 = vrot.lane.b32.xlu1 %v1609_v33, %s1884_s4 }
0x12f3   :  { %v1613_v62 = vpop.eup %1612 }
0x12f4   :  { %v1050_v35 = vmul.f32 %v1613_v62, %v1048_v17  ;;  %vm1055_vm6 = vweird.f32 %v1613_v62 }
0x12f5   :  { %vm1056_vm13 = vmor %vm1054_vm12, %vm1055_vm6 }
0x12f6   :  { %v1051_v36 = vsub.f32 1.0, %v1050_v35 }
0x12f8   :  { %v1052_v37 = vmul.f32 %v1613_v62, %v1051_v36 }
0x12f9   :  { %680 = vrot.lane.b32.xlu1 %v2146_v19, %s1885_s27 }
0x12fa   :  { %v1053_v38 = vadd.f32 %v1613_v62, %v1052_v37 }
0x12fc   :  { %v1057_v42 = vsel %vm1056_vm13, %v1613_v62, %v1053_v38 }
0x12fd   :  { %v1062_v19 = vsel %vm1059_vm14, %v1061_v27, %v1057_v42 }
0x12fe   :  { %v1068_v45 = vmul.f32 %v1066_v9, %v1062_v19 }
0x135b   :  { %v1071_v29 = vpop.permute.xlu1 %1070 }
0x135c   :  { %v1073_v30 = vmul.f32 %v1071_v29, %v1062_v19 }
0x135e   :  { %1075 = vrot.lane.b32.xlu0 %v1073_v30, %s1885_s27 }
0x1363   :  { %v750_v43 = vpop.permute.xlu1 %749 }
0x1364   :  { %v752_v50 = vmul.f32 %v750_v43, %v730_v15 }
0x1366   :  { %606 = vrot.lane.b32.xlu0 %v2122_v26, %s1885_s27 }
0x136b   :  { %v681_v32 = vpop.permute.xlu1 %680 }
0x136c   :  { %683 = vst.msk [vmem:[#allocation2 + $0x8] sm:$0x30] %vm391_vm10, %v681_v32 }
0x13d0   :  { %v1076_v46 = vpop.permute.xlu0 %1075 }
0x13d1   :  { %v1078_v47 = vadd.f32 %v1076_v46, %v1068_v45 }
0x13d3   :  { %1614 = vtanh.f32 %v1078_v47  ;;  %v1133_v13 = vrot.slane %v1078_v47, 6 }
0x13d8   :  { %v607_v48 = vpop.permute.xlu0 %606 }
0x13d9   :  { %v1615_v49 = vpop.eup %1614  ;;  %609 = vst.msk [vmem:[#allocation2 + $0x8] sm:$0xc] %vm316_vm9, %v607_v48 }
0x13da   :  { %1081 = vrot.lane.b32.xlu2 %v1615_v49, %s1884_s4 }
0x13e2   :  { %754 = vrot.lane.b32.xlu2 %v752_v50, %s1885_s27 }
0x1434   :  { %v1082_v51 = vpop.permute.xlu2 %1081 }
0x1435   :  { %v1084_v26 = vmul.f32 %v1082_v51, %v1062_v19 }
0x1437   :  { %v1086_v52 = vrot.slane %v1084_v26, 6 }
0x1439   :  { %1087 = vrot.lane.b32.xlu0 %v1086_v52, %s1885_s27 }
0x143c   :  { %v755_v53 = vpop.permute.xlu2 %754 }
0x143d   :  { %757 = vst.msk [vmem:[#allocation2 + $0x8] sm:$0xc0] %vm466_vm11, %v755_v53 }
0x143e   :  { %758 = vst.msk [vmem:[#allocation15 - $0x6] sm:$0xc0] %vm466_vm11, %v755_v53 }
0x1444   :  { %v765_v54 = vld [vmem:[#allocation2 + $0x8] sm:$0xff] }
0x1445   :  { %1482 = vmatmul.msk.f32.gmra.mxu2 %vm174_vm1, %v765_v54 }
0x14ab   :  { %v1088_v55 = vpop.permute.xlu0 %1087 }
0x14ac   :  { %1493 = vmatmul.msk.f32.vlgmr.msrb.gmra.mxu0 %vm174_vm1, %v1088_v55 }
0x14c8   :  { %v804_v56 = vpop.f32.mrf.mxu2 }
0x14c9   :  { %v2192_v57 = vadd.f32 %v2100_v41, %v804_v56 }
0x1529   :  { %v1108_v58 = vpop.f32.mrf.mxu0 }
0x152a   :  { %v1111_v59 = vadd.f32 %v1108_v58, %v2192_v57 }
0x152c   :  { %1616 = vtanh.f32 %v1111_v59  ;;  %v1494_v60 = vmul.f32 -1.442695, %v1111_v59 }
0x152e   :  { %1618 = vpow2.f32 %v1494_v60 }
0x1532   :  { %v1617_v61 = vpop.eup %1616 }
0x1533   :  { %1137 = vrot.lane.b32.xlu1 %v1617_v61, %s1884_s4 }
0x1534   :  { %v1619_v63 = vpop.eup %1618 }
0x1535   :  { %v1115_v0 = vadd.f32 1.0, %v1619_v63 }
0x1537   :  { %1620 = vrcp.f32 %v1115_v0  ;;  %v1127_v41 = vand.u32 2147483648, %v1115_v0  ;;  %vm1121_vm10 = vweird.f32 %v1115_v0  ;;  %v1125_v6 = vand.u32 2147483647, %v1115_v0 }
0x1539   :  { %v1128_v10 = vor.u32 1.1754944e-38, %v1127_v41  ;;  %vm1126_vm2 = vcmp.eq.f32.partialorder %v1125_v6, 8.507059e+37 }
0x153d   :  { %v1621_v1 = vpop.eup %1620 }
0x153e   :  { %v1117_v2 = vmul.f32 %v1621_v1, %v1115_v0  ;;  %vm1122_vm9 = vweird.f32 %v1621_v1 }
0x153f   :  { %vm1123_vm15 = vmor %vm1121_vm10, %vm1122_vm9 }
0x1540   :  { %v1118_v3 = vsub.f32 1.0, %v1117_v2 }
0x1542   :  { %v1119_v4 = vmul.f32 %v1621_v1, %v1118_v3 }
0x1544   :  { %v1120_v5 = vadd.f32 %v1621_v1, %v1119_v4 }
0x1546   :  { %v1124_v8 = vsel %vm1123_vm15, %v1621_v1, %v1120_v5 }
0x1547   :  { %v1129_v11 = vsel %vm1126_vm2, %v1128_v10, %v1124_v8 }
0x1548   :  { %v1135_v14 = vmul.f32 %v1133_v13, %v1129_v11 }
0x15a5   :  { %v1138_v7 = vpop.permute.xlu1 %1137 }
0x15a6   :  { %v1140_v12 = vmul.f32 %v1138_v7, %v1129_v11 }
0x15a8   :  { %1142 = vrot.lane.b32.xlu2 %v1140_v12, %s1885_s27 }
0x1602   :  { %v1143_v15 = vpop.permute.xlu2 %1142 }
0x1603   :  { %v1145_v16 = vadd.f32 %v1143_v15, %v1135_v14 }
0x1605   :  { %1622 = vtanh.f32 %v1145_v16  ;;  %v1202_v30 = vrot.slane %v1145_v16, 6 }
0x160b   :  { %v1623_v18 = vpop.eup %1622 }
0x160c   :  { %1148 = vrot.lane.b32.xlu0 %v1623_v18, %s1884_s4 }
0x167e   :  { %v1149_v21 = vpop.permute.xlu0 %1148 }
0x167f   :  { %v1151_v22 = vmul.f32 %v1149_v21, %v1129_v11 }
0x1681   :  { %1153 = vrot.lane.b32.xlu1 %v1151_v22, %s1885_s27 }
0x16f3   :  { %v1154_v23 = vpop.permute.xlu1 %1153 }
0x16f4   :  { %1495 = vmatmul.msk.f32.vlgmr.msra.gmra.mxu1 %vm174_vm1, %v1154_v23 }
0x1771   :  { %v1174_v24 = vpop.f32.mrf.mxu1 }
0x1772   :  { %v1178_v25 = vrot.slane %v1174_v24, 6 }
0x1774   :  { %v1180_v20 = vadd.f32 %v1178_v25, %v2192_v57 }
0x1776   :  { %1624 = vtanh.f32 %v1180_v20  ;;  %v1496_v33 = vmul.f32 -1.442695, %v1180_v20 }
0x1778   :  { %1626 = vpow2.f32 %v1496_v33 }
0x177c   :  { %v1625_v31 = vpop.eup %1624 }
0x177d   :  { %1206 = vrot.lane.b32.xlu2 %v1625_v31, %s1884_s4 }
0x177e   :  { %v1627_v34 = vpop.eup %1626 }
0x177f   :  { %v1184_v44 = vadd.f32 1.0, %v1627_v34 }
0x1781   :  { %1628 = vrcp.f32 %v1184_v44  ;;  %v1196_v38 = vand.u32 2147483648, %v1184_v44  ;;  %vm1190_vm4 = vweird.f32 %v1184_v44  ;;  %v1194_v39 = vand.u32 2147483647, %v1184_v44 }
0x1783   :  { %v1197_v42 = vor.u32 1.1754944e-38, %v1196_v38  ;;  %vm1195_vm5 = vcmp.eq.f32.partialorder %v1194_v39, 8.507059e+37 }
0x1787   :  { %v1629_v17 = vpop.eup %1628 }
0x1788   :  { %v1186_v62 = vmul.f32 %v1629_v17, %v1184_v44  ;;  %vm1191_vm3 = vweird.f32 %v1629_v17 }
0x1789   :  { %vm1192_vm0 = vmor %vm1190_vm4, %vm1191_vm3 }
0x178a   :  { %v1187_v35 = vsub.f32 1.0, %v1186_v62 }
0x178c   :  { %v1188_v36 = vmul.f32 %v1629_v17, %v1187_v35 }
0x178e   :  { %v1189_v37 = vadd.f32 %v1629_v17, %v1188_v36 }
0x1790   :  { %v1193_v40 = vsel %vm1192_vm0, %v1629_v17, %v1189_v37 }
0x1791   :  { %v1198_v29 = vsel %vm1195_vm5, %v1197_v42, %v1193_v40 }
0x1792   :  { %v1204_v43 = vmul.f32 %v1202_v30, %v1198_v29 }
0x17d7   :  { %v1207_v27 = vpop.permute.xlu2 %1206 }
0x17d8   :  { %v1209_v19 = vmul.f32 %v1207_v27, %v1198_v29 }
0x17da   :  { %1211 = vrot.lane.b32.xlu0 %v1209_v19, %s1885_s27 }
0x184c   :  { %v1212_v32 = vpop.permute.xlu0 %1211 }
0x184d   :  { %v1214_v9 = vadd.f32 %v1212_v32, %v1204_v43  ;;  %v1376_v32 = vld [vmem:[%s2257_s9 + $0x18] sm:$0xff] }
0x184e   :  { %1398 = vmatpush.msra.mxu0 %v1376_v32 }
0x184f   :  { %1630 = vtanh.f32 %v1214_v9  ;;  %v1272_v41 = vrot.slane %v1214_v9, 6  ;;  %v1375_v9 = vld [vmem:[%s2257_s9 + $0x10] sm:$0xff] }
0x1850   :  { %1399 = vmatpush.msra.mxu0 %v1375_v9 }
0x1855   :  { %v1631_v45 = vpop.eup %1630 }
0x1856   :  { %1217 = vrot.lane.b32.xlu1 %v1631_v45, %s1884_s4  ;;  %v1373_v45 = vld [vmem:[%s2257_s9] sm:$0xff] }
0x18c8   :  { %v1218_v46 = vpop.permute.xlu1 %1217 }
0x18c9   :  { %v1220_v47 = vmul.f32 %v1218_v46, %v1198_v29 }
0x18cb   :  { %v1222_v48 = vrot.slane %v1220_v47, 2 }
0x18cd   :  { %1223 = vrot.lane.b32.xlu2 %v1222_v48, %s1885_s27 }
0x1927   :  { %v1224_v49 = vpop.permute.xlu2 %1223 }
0x1928   :  { %1497 = vmatmul.msk.f32.vlgmr.msrb.gmra.mxu2 %vm174_vm1, %v1224_v49  ;;  %v1519_v49 = vld [vmem:[#allocation12] ss:$0 sm:$0xff] }
0x19ab   :  { %v1244_v50 = vpop.f32.mrf.mxu2 }
0x19ac   :  { %v1248_v51 = vrot.slane %v1244_v50, 4 }
0x19ae   :  { %v1250_v26 = vadd.f32 %v1248_v51, %v2192_v57 }
0x19b0   :  { %1632 = vtanh.f32 %v1250_v26  ;;  %v1498_v53 = vmul.f32 -1.442695, %v1250_v26 }
0x19b2   :  { %1634 = vpow2.f32 %v1498_v53 }
0x19b6   :  { %v1633_v52 = vpop.eup %1632 }
0x19b7   :  { %1276 = vrot.lane.b32.xlu0 %v1633_v52, %s1884_s4 }
0x19b8   :  { %v1635_v54 = vpop.eup %1634 }
0x19b9   :  { %v1254_v55 = vadd.f32 1.0, %v1635_v54 }
0x19bb   :  { %1636 = vrcp.f32 %v1254_v55  ;;  %v1266_v63 = vand.u32 2147483648, %v1254_v55  ;;  %vm1260_vm8 = vweird.f32 %v1254_v55  ;;  %v1264_v0 = vand.u32 2147483647, %v1254_v55 }
0x19bd   :  { %v1267_v2 = vor.u32 1.1754944e-38, %v1266_v63  ;;  %vm1265_vm12 = vcmp.eq.f32.partialorder %v1264_v0, 8.507059e+37 }
0x19c1   :  { %v1637_v56 = vpop.eup %1636 }
0x19c2   :  { %v1256_v58 = vmul.f32 %v1637_v56, %v1254_v55  ;;  %vm1261_vm7 = vweird.f32 %v1637_v56 }
0x19c3   :  { %vm1262_vm6 = vmor %vm1260_vm8, %vm1261_vm7 }
0x19c4   :  { %v1257_v59 = vsub.f32 1.0, %v1256_v58 }
0x19c6   :  { %v1258_v61 = vmul.f32 %v1637_v56, %v1257_v59 }
0x19c8   :  { %v1259_v60 = vadd.f32 %v1637_v56, %v1258_v61 }
0x19ca   :  { %v1263_v1 = vsel %vm1262_vm6, %v1637_v56, %v1259_v60 }
0x19cb   :  { %v1268_v4 = vsel %vm1265_vm12, %v1267_v2, %v1263_v1 }
0x19cc   :  { %v1274_v6 = vmul.f32 %v1272_v41, %v1268_v4 }
0x1a29   :  { %v1277_v3 = vpop.permute.xlu0 %1276 }
0x1a2a   :  { %v1279_v5 = vmul.f32 %v1277_v3, %v1268_v4 }
0x1a2c   :  { %1281 = vrot.lane.b32.xlu1 %v1279_v5, %s1885_s27 }
0x1a9e   :  { %v1282_v8 = vpop.permute.xlu1 %1281 }
0x1a9f   :  { %v1284_v10 = vadd.f32 %v1282_v8, %v1274_v6 }
0x1aa1   :  { %1638 = vtanh.f32 %v1284_v10  ;;  %v1342_v38 = vrot.slane %v1284_v10, 6 }
0x1aa7   :  { %v1639_v7 = vpop.eup %1638 }
0x1aa8   :  { %1287 = vrot.lane.b32.xlu2 %v1639_v7, %s1884_s4 }
0x1b02   :  { %v1288_v11 = vpop.permute.xlu2 %1287 }
0x1b03   :  { %v1290_v12 = vmul.f32 %v1288_v11, %v1268_v4 }
0x1b05   :  { %v1292_v13 = vrot.slane %v1290_v12, 4 }
0x1b07   :  { %1293 = vrot.lane.b32.xlu0 %v1292_v13, %s1885_s27 }
0x1b79   :  { %v1294_v14 = vpop.permute.xlu0 %1293 }
0x1b7a   :  { %1499 = vmatmul.msk.f32.vlgmr.msra.gmra.mxu3 %vm174_vm1, %v1294_v14 }
0x1bfd   :  { %v1314_v15 = vpop.f32.mrf.mxu3 }
0x1bfe   :  { %v1318_v16 = vrot.slane %v1314_v15, 2 }
0x1c00   :  { %v1320_v18 = vadd.f32 %v1318_v16, %v2192_v57 }
0x1c02   :  { %1640 = vtanh.f32 %v1320_v18  ;;  %v1500_v22 = vmul.f32 -1.442695, %v1320_v18 }
0x1c04   :  { %1642 = vpow2.f32 %v1500_v22 }
0x1c08   :  { %v1641_v21 = vpop.eup %1640 }
0x1c09   :  { %1346 = vrot.lane.b32.xlu1 %v1641_v21, %s1884_s4 }
0x1c0a   :  { %v1643_v23 = vpop.eup %1642 }
0x1c0b   :  { %v1324_v24 = vadd.f32 1.0, %v1643_v23 }
0x1c0d   :  { %1644 = vrcp.f32 %v1324_v24  ;;  %v1336_v44 = vand.u32 2147483648, %v1324_v24  ;;  %vm1330_vm14 = vweird.f32 %v1324_v24  ;;  %v1334_v17 = vand.u32 2147483647, %v1324_v24 }
0x1c0f   :  { %v1337_v62 = vor.u32 1.1754944e-38, %v1336_v44  ;;  %vm1335_vm10 = vcmp.eq.f32.partialorder %v1334_v17, 8.507059e+37 }
0x1c13   :  { %v1645_v25 = vpop.eup %1644 }
0x1c14   :  { %v1326_v20 = vmul.f32 %v1645_v25, %v1324_v24  ;;  %vm1331_vm13 = vweird.f32 %v1645_v25 }
0x1c15   :  { %vm1332_vm9 = vmor %vm1330_vm14, %vm1331_vm13 }
0x1c16   :  { %v1327_v31 = vsub.f32 1.0, %v1326_v20 }
0x1c18   :  { %v1328_v33 = vmul.f32 %v1645_v25, %v1327_v31 }
0x1c1a   :  { %v1329_v34 = vadd.f32 %v1645_v25, %v1328_v33 }
0x1c1c   :  { %v1333_v57 = vsel %vm1332_vm9, %v1645_v25, %v1329_v34 }
0x1c1d   :  { %v1338_v36 = vsel %vm1335_vm10, %v1337_v62, %v1333_v57 }
0x1c1e   :  { %v1344_v39 = vmul.f32 %v1342_v38, %v1338_v36 }
0x1c7b   :  { %v1347_v35 = vpop.permute.xlu1 %1346 }
0x1c7c   :  { %v1349_v37 = vmul.f32 %v1347_v35, %v1338_v36 }
0x1c7e   :  { %1351 = vrot.lane.b32.xlu2 %v1349_v37, %s1885_s27 }
0x1cd8   :  { %v1352_v40 = vpop.permute.xlu2 %1351 }
0x1cd9   :  { %v1354_v42 = vadd.f32 %v1352_v40, %v1344_v39 }
0x1cdb   :  { %1646 = vtanh.f32 %v1354_v42 }
0x1ce1   :  { %v1647_v27 = vpop.eup %1646 }
0x1ce2   :  { %1357 = vrot.lane.b32.xlu0 %v1647_v27, %s1884_s4 }
0x1cea   :  { %760 = vrot.lane.b32.xlu0 %v2171_v28, %s1886_s2  ;;  %v1374_v28 = vld [vmem:[%s2257_s9 + $0x8] sm:$0xff]  ;;  %s1889_s9 = smov [#allocation17]  }
0x1ceb   :  { %1400 = vmatpush.msra.mxu0 %v1374_v28  ;;  %s1436_s24 = sshll.u32 %s1889_s9, 4  ;;  %s1437_s24 = int_to_ptr.vmem [resolvable:$true] %s1436_s24 }
0x1ced   :  { %1401 = vmatpush.msra.mxu0 %v1373_v45 }
0x1d54   :  { %v1358_v29 = vpop.permute.xlu0 %1357 }
0x1d55   :  { %v1360_v19 = vmul.f32 %v1358_v29, %v1338_v36 }
0x1d57   :  { %v1381_v30 = vrot.slane %v1360_v19, 6  ;;  %1362 = vrot.lane.b32.xlu2 %v1360_v19, %s1885_s27 }
0x1d59   :  { %1382 = vrot.lane.b32.xlu1 %v1381_v30, %s1885_s27 }
0x1d5c   :  { %v761_v43 = vpop.permute.xlu0 %760 }
0x1d5d   :  { %763 = vst.msk [vmem:[#allocation17 - $0x6] sm:$0xc0] %vm466_vm11, %v761_v43 }
0x1d61   :  { %1368 = vrot.lane.b32.xlu1 %v1354_v42, %s1886_s2 }
0x1db1   :  { %v1363_v46 = vpop.permute.xlu2 %1362 }
0x1db2   :  { %1366 = vst.msk [vmem:[#allocation15 - $0x4] sm:$0xc0] %vm466_vm11, %v1363_v46 }
0x1db3   :  { %1431 = dma.vmem_to_hbm [thread:$0]  %s1424_s22, 64, %s1426_s3, [#allocation16], %s1885_s27, %s1885_s27, %s1888_s23  }
0x1dcb   :  { %v1383_v47 = vpop.permute.xlu1 %1382 }
0x1dcc   :  { %1501 = vmatmul.msk.f32.vlgmr.msra.gmra.mxu0 %vm174_vm1, %v1383_v47  ;;  %vm1406_vm1 = vcmask 25600  }
0x1dd3   :  { %v1369_v48 = vpop.permute.xlu1 %1368 }
0x1dd4   :  { %1372 = vst.msk [vmem:[#allocation17 - $0x4] sm:$0xc0] %vm466_vm11, %v1369_v48 }
0x1dd5   :  { %1444 = dma.vmem_to_hbm [thread:$0]  %s1437_s24, 64, %s1439_s26, [#allocation16], %s1885_s27, %s1885_s27, %s1888_s23  }
0x1e49   :  { %v1403_v50 = vpop.f32.mrf.mxu0 }
0x1e4a   :  { %v1404_v51 = vadd.f32 %v1519_v49, %v1403_v50 }
0x1e4c   :  { %1407 = vst.msk [vmem:[#allocation14] sm:$0x3] %vm1406_vm1, %v1404_v51 }
0x1e4d   :  { %1418 = dma.vmem_to_hbm [thread:$0]  %s1414_s6, 32, %s1416_s1, [#allocation5]  }
0x1e4e   :  { %1872 = dma.done.wait [#allocation5], 32  }
0x1e4f   :  { %1873 = vsyncadd [#allocation5], 4294967264 }
0x1e50   :  { %1874 = dma.done.wait [#allocation16], 128  }
0x1e51   :  { %1875 = vsyncadd [#allocation16], 4294967168 }
0x1e52   :  { %1457 = vsyncpa [#allocation4], 1 }
0x1e53   :  { %1458 = vsyncpa [#allocation7], 1 }
0x1e54   :  { %1459 = vsyncpa [#allocation10], 1 }
0x1e55   :  { %1460 = vsyncpa [#allocation13], 1 }
0x1e56   :  { %1461 = vsyncpa [#allocation5], 1 }
0x1e57   :  { %1462 = vsyncpa [#allocation16], 1 }

</bundles_post_ra>
